<compile_context>
chip_gen: v6e
topology: v6e:2x2x1
jax: 0.10.0
libtpu: 0.0.40
codegen_flags: <defaults>
</compile_context>

<pallas_src>
import functools
import math

import jax
import jax.numpy as jnp
from jax import lax
from jax.experimental import pallas as pl
from jax.experimental.pallas import tpu as pltpu


# ----------------------------------------------------------------------------
# Config (small, consistent with a BertConfig)
# ----------------------------------------------------------------------------
VOCAB_SIZE = 100
TYPE_VOCAB_SIZE = 2
MAX_POS = 16
HIDDEN = 32
NUM_HEADS = 4
HEAD_DIM = HIDDEN // NUM_HEADS
INTERMEDIATE = 64
NUM_LAYERS = 3
LN_EPS = 1e-12

BATCH = 2
SEQ = 8

LANE = 128  # TPU lane width (last-dim vector width)


# ----------------------------------------------------------------------------
# In-kernel helpers
# ----------------------------------------------------------------------------
def _ln(x, g, b):
    # BERTLayerNorm: gamma * (x - u) / sqrt(var + eps) + beta
    u = jnp.mean(x, axis=-1, keepdims=True)
    s = jnp.mean((x - u) ** 2, axis=-1, keepdims=True)
    return g * ((x - u) / jnp.sqrt(s + LN_EPS)) + b


def _gelu(x):
    # tanh-approx GELU: the transcendental goes to the EUP slot (free-ish).
    # TODO(synk): deviates from PyTorch's exact-erf GELU by ~1e-3 max abs.
    c = math.sqrt(2.0 / math.pi)
    return 0.5 * x * (1.0 + jnp.tanh(c * (x + 0.044715 * x * x * x)))


# ----------------------------------------------------------------------------
# Fused kernel: one grid step == one encoder layer.
#   step 0       : also applies the embedding LayerNorm into the scratch state
#   last step    : also runs the pooler (dense + tanh on first tokens)
# ----------------------------------------------------------------------------
def fused_bert_kernel(emb_ref, mask_ref, embln_ref,
                      wqkv_ref, bqkv_ref, wao_ref, wi_ref, bi_ref, wo_ref,
                      vec_ref, poolw_ref, poolb_ref,
                      layers_ref, pooled_ref, h_sc,
                      *, num_heads, head_dim, batch, seq, hidden, dense_rows):
    l = pl.program_id(0)

    # embedding LayerNorm (dropout = identity in eval) -> resident hidden state
    @pl.when(l == 0)
    def _():
        h_sc[...] = _ln(emb_ref[...], embln_ref[0:1, :], embln_ref[1:2, :])

    h = h_sc[...]                                            # [N, H]

    # fused QKV projection on the whole flattened batch.  1/sqrt(head_dim) is
    # already folded into the Q columns / bias at pack time.
    qkv = (jnp.dot(h, wqkv_ref[...], preferred_element_type=jnp.float32)
           + bqkv_ref[...])                                  # [N, 3H]

    # attention per batch element / head on [S, S] tiles (static unroll)
    ctx_rows = []
    for b in range(batch):
        r0 = b * seq
        qkv_b = qkv[r0:r0 + seq, :]                          # [S, 3H]
        mask_b = mask_ref[b:b + 1, :]                        # [1, S] additive
        head_ctx = []
        for hi in range(num_heads):
            lo = hi * head_dim
            qh = qkv_b[:, lo:lo + head_dim]
            kh = qkv_b[:, hidden + lo:hidden + lo + head_dim]
            vh = qkv_b[:, 2 * hidden + lo:2 * hidden + lo + head_dim]

            # scores = (q / sqrt(d)) @ k^T  (contract last axes, no transpose)
            s = lax.dot_general(qh, kh, (((1,), (1,)), ((), ())),
                                preferred_element_type=jnp.float32)   # [S, S]
            s = s + mask_b
            s = s - jnp.max(s, axis=-1, keepdims=True)
            e = jnp.exp(s)
            # softmax denominator on the EUP (approx reciprocal, ~1e-4 rel tol)
            p = e * pl.reciprocal(jnp.sum(e, axis=-1, keepdims=True),
                                  approx=True)
            head_ctx.append(jnp.dot(p, vh,
                                    preferred_element_type=jnp.float32))
        ctx_rows.append(jnp.concatenate(head_ctx, axis=1))   # [S, H]
    ctx = jnp.concatenate(ctx_rows, axis=0)                  # [N, H]

    # single attention-output projection (K = H contraction)
    att = (jnp.dot(ctx, wao_ref[...], preferred_element_type=jnp.float32)
           + vec_ref[0:1, :])                                # + bao
    h1 = _ln(att + h, vec_ref[1:2, :], vec_ref[2:3, :])      # ln1

    inter = _gelu(jnp.dot(h1, wi_ref[...], preferred_element_type=jnp.float32)
                  + bi_ref[...])
    out = (jnp.dot(inter, wo_ref[...], preferred_element_type=jnp.float32)
           + vec_ref[3:4, :])                                # + bo
    h_new = _ln(out + h1, vec_ref[4:5, :], vec_ref[5:6, :])  # ln2

    h_sc[...] = h_new

    # lane-dense layer output: pack [N, H] -> [dense_rows, 128], one store.
    # dense[j, c*H:(c+1)*H] = h_new[c*dense_rows + j]; wrapper undoes this.
    chunks = LANE // hidden
    dense = jnp.concatenate(
        [h_new[c * dense_rows:(c + 1) * dense_rows, :] for c in range(chunks)],
        axis=1)                                              # [dense_rows, 128]
    layers_ref[...] = dense

    # pooler (dense + tanh on the first token of each batch element): one
    # gather, one [B,H]@[H,H] dot, one tanh, one store — only at the last layer.
    @pl.when(l == pl.num_programs(0) - 1)
    def _():
        first = jnp.concatenate(
            [h_new[b * seq:b * seq + 1, :] for b in range(batch)], axis=0)
        pooled_ref[...] = jnp.tanh(
            jnp.dot(first, poolw_ref[...], preferred_element_type=jnp.float32)
            + poolb_ref[...])


# ----------------------------------------------------------------------------
# Parameter packing / init
# ----------------------------------------------------------------------------
def _pack_layer_params(layers, num_run):
    inv_sqrt_d = 1.0 / math.sqrt(HEAD_DIM)
    layers = layers[:num_run]
    # fold 1/sqrt(head_dim) into the Q projection (weights + bias)
    wqkv = jnp.stack([jnp.concatenate(
        [lp["wq"] * inv_sqrt_d, lp["wk"], lp["wv"]], axis=1)
        for lp in layers])                                   # [L, H, 3H]
    bqkv = jnp.stack([jnp.concatenate(
        [lp["bq"] * inv_sqrt_d, lp["bk"], lp["bv"]])[None, :]
        for lp in layers])                                   # [L, 1, 3H]
    wao = jnp.stack([lp["wao"] for lp in layers])            # [L, H, H]
    wi = jnp.stack([lp["wi"] for lp in layers])              # [L, H, I]
    bi = jnp.stack([lp["bi"][None, :] for lp in layers])     # [L, 1, I]
    wo = jnp.stack([lp["wo"] for lp in layers])              # [L, I, H]
    vec = jnp.stack([jnp.stack([lp["bao"], lp["ln1_g"], lp["ln1_b"],
                                lp["bo"], lp["ln2_g"], lp["ln2_b"]])
                     for lp in layers])                      # [L, 6, H]
    return wqkv, bqkv, wao, wi, bi, wo, vec


def init_params(key):
    def norm(k, shape):
        return 0.02 * jax.random.normal(k, shape, dtype=jnp.float32)

    keys = iter(jax.random.split(key, 64))
    params = {
        "word_emb": norm(next(keys), (VOCAB_SIZE, HIDDEN)),
        "pos_emb": norm(next(keys), (MAX_POS, HIDDEN)),
        "tok_emb": norm(next(keys), (TYPE_VOCAB_SIZE, HIDDEN)),
        "emb_ln_g": jnp.ones((HIDDEN,), jnp.float32),
        "emb_ln_b": jnp.zeros((HIDDEN,), jnp.float32),
        "pooler_w": norm(next(keys), (HIDDEN, HIDDEN)),
        "pooler_b": jnp.zeros((HIDDEN,), jnp.float32),
        "layers": [],
    }
    for _ in range(NUM_LAYERS):
        lp = {
            "wq": norm(next(keys), (HIDDEN, HIDDEN)), "bq": jnp.zeros((HIDDEN,), jnp.float32),
            "wk": norm(next(keys), (HIDDEN, HIDDEN)), "bk": jnp.zeros((HIDDEN,), jnp.float32),
            "wv": norm(next(keys), (HIDDEN, HIDDEN)), "bv": jnp.zeros((HIDDEN,), jnp.float32),
            "wao": norm(next(keys), (HIDDEN, HIDDEN)), "bao": jnp.zeros((HIDDEN,), jnp.float32),
            "ln1_g": jnp.ones((HIDDEN,), jnp.float32), "ln1_b": jnp.zeros((HIDDEN,), jnp.float32),
            "wi": norm(next(keys), (HIDDEN, INTERMEDIATE)), "bi": jnp.zeros((INTERMEDIATE,), jnp.float32),
            "wo": norm(next(keys), (INTERMEDIATE, HIDDEN)), "bo": jnp.zeros((HIDDEN,), jnp.float32),
            "ln2_g": jnp.ones((HIDDEN,), jnp.float32), "ln2_b": jnp.zeros((HIDDEN,), jnp.float32),
        }
        params["layers"].append(lp)
    return params


# ----------------------------------------------------------------------------
# VMEM budget: 2x (one layer's weight blocks + resident blocks) + headroom,
# with last-two-dims padded to (8, 128) f32 tiles.
# ----------------------------------------------------------------------------
def _pad_bytes(r, c):
    return (-(-r // 8) * 8) * (-(-c // 128) * 128) * 4


def _vmem_limit_bytes(n, bsz, seq, dense_rows):
    per_layer = (_pad_bytes(HIDDEN, 3 * HIDDEN) + _pad_bytes(1, 3 * HIDDEN)
                 + _pad_bytes(HIDDEN, HIDDEN) + _pad_bytes(HIDDEN, INTERMEDIATE)
                 + _pad_bytes(1, INTERMEDIATE) + _pad_bytes(INTERMEDIATE, HIDDEN)
                 + _pad_bytes(6, HIDDEN))
    resident = (_pad_bytes(n, HIDDEN) + _pad_bytes(bsz, seq)
                + _pad_bytes(2, HIDDEN) + _pad_bytes(HIDDEN, HIDDEN)
                + _pad_bytes(1, HIDDEN) + _pad_bytes(dense_rows, LANE)
                + _pad_bytes(bsz, HIDDEN) + _pad_bytes(n, HIDDEN))
    return 2 * (per_layer + resident) + (4 << 20)   # 2x buffers + headroom


# ----------------------------------------------------------------------------
# Full forward pass (matches EarlyStopBertModel.forward)
# ----------------------------------------------------------------------------
def early_stop_bert_forward(params, num_hidden_stop, input_ids,
                            token_type_ids=None, attention_mask=None):
    bsz, seq = input_ids.shape
    n = bsz * seq
    if attention_mask is None:
        attention_mask = jnp.ones_like(input_ids)
    if token_type_ids is None:
        token_type_ids = jnp.zeros_like(input_ids)

    # number of encoder layers actually executed (early stop is a static int;
    # if num_hidden_stop is out of range the PyTorch loop runs all layers)
    num_run = num_hidden_stop if 1 <= num_hidden_stop <= NUM_LAYERS else NUM_LAYERS

    # per-batch additive key mask, matches PyTorch's (1 - m) * -10000 broadcast
    ext_mask = (1.0 - attention_mask.astype(jnp.float32)) * -10000.0     # [B, S]

    # embedding table gathers are plain-JAX glue; the LayerNorm runs in-kernel
    positions = jnp.arange(seq)
    emb = (params["word_emb"][input_ids]
           + params["pos_emb"][positions][None, :, :]
           + params["tok_emb"][token_type_ids]).reshape(n, HIDDEN)

    embln = jnp.stack([params["emb_ln_g"], params["emb_ln_b"]])           # [2, H]
    wqkv, bqkv, wao, wi, bi, wo, vec = _pack_layer_params(params["layers"], num_run)

    # lane-dense layer-output packing: [N, H] -> [dense_rows, 128]
    assert (n * HIDDEN) % LANE == 0 and LANE % HIDDEN == 0
    dense_rows = (n * HIDDEN) // LANE
    chunks = LANE // HIDDEN
    assert dense_rows * chunks == n

    kernel = functools.partial(
        fused_bert_kernel, num_heads=NUM_HEADS, head_dim=HEAD_DIM,
        batch=bsz, seq=seq, hidden=HIDDEN, dense_rows=dense_rows)

    def const2d(shape):           # layer-invariant input (revisited block)
        return pl.BlockSpec(shape, lambda l: (0, 0))

    def per_layer(shape):         # streamed per-layer weights, layer axis squeezed
        return pl.BlockSpec((None,) + shape, lambda l: (l, 0, 0))

    in_specs = [
        const2d((n, HIDDEN)),                 # emb
        const2d((bsz, seq)),                  # mask
        const2d((2, HIDDEN)),                 # embln
        per_layer((HIDDEN, 3 * HIDDEN)),      # wqkv
        per_layer((1, 3 * HIDDEN)),           # bqkv
        per_layer((HIDDEN, HIDDEN)),          # wao
        per_layer((HIDDEN, INTERMEDIATE)),    # wi
        per_layer((1, INTERMEDIATE)),         # bi
        per_layer((INTERMEDIATE, HIDDEN)),    # wo
        per_layer((6, HIDDEN)),               # vec
        const2d((HIDDEN, HIDDEN)),            # pooler weight
        const2d((1, HIDDEN)),                 # pooler bias
    ]
    out_specs = [
        pl.BlockSpec((None, dense_rows, LANE), lambda l: (l, 0, 0)),  # layers
        pl.BlockSpec((bsz, HIDDEN), lambda l: (0, 0)),                # pooled
    ]

    layers_dense, pooled = pl.pallas_call(
        kernel,
        out_shape=(jax.ShapeDtypeStruct((num_run, dense_rows, LANE), jnp.float32),
                   jax.ShapeDtypeStruct((bsz, HIDDEN), jnp.float32)),
        grid_spec=pltpu.PrefetchScalarGridSpec(
            num_scalar_prefetch=0,
            grid=(num_run,),
            in_specs=in_specs,
            out_specs=out_specs,
            scratch_shapes=[pltpu.VMEM((n, HIDDEN), jnp.float32)]),
        compiler_params=pltpu.CompilerParams(
            dimension_semantics=("arbitrary",),      # hidden state carries across layers
            vmem_limit_bytes=_vmem_limit_bytes(n, bsz, seq, dense_rows)),
    )(emb, ext_mask, embln, wqkv, bqkv, wao, wi, bi, wo, vec,
      params["pooler_w"], params["pooler_b"].reshape(1, HIDDEN))

    # unpack the lane-dense layer outputs back to [num_run, B, S, H]
    layers_out = layers_dense.reshape(num_run, dense_rows, chunks, HIDDEN)
    layers_out = jnp.transpose(layers_out, (0, 2, 1, 3)).reshape(num_run, n, HIDDEN)
    layers_out = layers_out.reshape(num_run, bsz, seq, HIDDEN)
    all_encoder_layers = [layers_out[i] for i in range(num_run)]
    return all_encoder_layers, pooled


# ----------------------------------------------------------------------------
if __name__ == "__main__":
    key = jax.random.PRNGKey(0)
    pkey, ikey, tkey = jax.random.split(key, 3)

    params = init_params(pkey)
    input_ids = jax.random.randint(ikey, (BATCH, SEQ), 0, VOCAB_SIZE, dtype=jnp.int32)
    token_type_ids = jax.random.randint(tkey, (BATCH, SEQ), 0, TYPE_VOCAB_SIZE, dtype=jnp.int32)
    attention_mask = jnp.ones((BATCH, SEQ), jnp.int32)

    num_hidden_stop = 2  # early-stop after 2 of 3 layers

    all_layers, pooled = early_stop_bert_forward(
        params, num_hidden_stop, input_ids, token_type_ids, attention_mask)

    jax.block_until_ready(pooled)
    for layer_out in all_layers:
        jax.block_until_ready(layer_out)

    assert len(all_layers) == num_hidden_stop
    assert all_layers[-1].shape == (BATCH, SEQ, HIDDEN)
    assert pooled.shape == (BATCH, HIDDEN)
    assert bool(jnp.all(jnp.isfinite(pooled)))
    assert all(bool(jnp.all(jnp.isfinite(lo))) for lo in all_layers)
    print("KERNEL_OK")
</pallas_src>

<mosaic_0001>
module attributes {stable_mosaic.version = 11 : i64} {
  func.func @fused_bert_kernel(%arg0: i32, %arg1: memref<16x32xf32, #tpu.memory_space<vmem>>, %arg2: memref<2x8xf32, #tpu.memory_space<vmem>>, %arg3: memref<2x32xf32, #tpu.memory_space<vmem>>, %arg4: memref<1x32x96xf32, #tpu.memory_space<vmem>>, %arg5: memref<1x1x96xf32, #tpu.memory_space<vmem>>, %arg6: memref<1x32x32xf32, #tpu.memory_space<vmem>>, %arg7: memref<1x32x64xf32, #tpu.memory_space<vmem>>, %arg8: memref<1x1x64xf32, #tpu.memory_space<vmem>>, %arg9: memref<1x64x32xf32, #tpu.memory_space<vmem>>, %arg10: memref<1x6x32xf32, #tpu.memory_space<vmem>>, %arg11: memref<32x32xf32, #tpu.memory_space<vmem>>, %arg12: memref<1x32xf32, #tpu.memory_space<vmem>>, %arg13: memref<1x4x128xf32, #tpu.memory_space<vmem>>, %arg14: memref<2x32xf32, #tpu.memory_space<vmem>>, %arg15: memref<16x32xf32, #tpu.memory_space<vmem>>) attributes {dimension_semantics = [#tpu.dimension_semantics<arbitrary>], iteration_bounds = array<i64: 2>, scalar_prefetch = 0 : i64, scratch_operands = 1 : i64, tpu.core_type = #tpu.core_type<tc>, window_params = [{pipeline_mode = #tpu.pipeline_mode<synchronous>, transform_indices = @transform_0, window_bounds = array<i64: 16, 32>}, {pipeline_mode = #tpu.pipeline_mode<synchronous>, transform_indices = @transform_1, window_bounds = array<i64: 2, 8>}, {pipeline_mode = #tpu.pipeline_mode<synchronous>, transform_indices = @transform_2, window_bounds = array<i64: 2, 32>}, {transform_indices = @transform_3, window_bounds = array<i64: 1, 32, 96>}, {transform_indices = @transform_4, window_bounds = array<i64: 1, 1, 96>}, {transform_indices = @transform_5, window_bounds = array<i64: 1, 32, 32>}, {transform_indices = @transform_6, window_bounds = array<i64: 1, 32, 64>}, {transform_indices = @transform_7, window_bounds = array<i64: 1, 1, 64>}, {transform_indices = @transform_8, window_bounds = array<i64: 1, 64, 32>}, {transform_indices = @transform_9, window_bounds = array<i64: 1, 6, 32>}, {pipeline_mode = #tpu.pipeline_mode<synchronous>, transform_indices = @transform_10, window_bounds = array<i64: 32, 32>}, {pipeline_mode = #tpu.pipeline_mode<synchronous>, transform_indices = @transform_11, window_bounds = array<i64: 1, 32>}, {transform_indices = @transform_12, window_bounds = array<i64: 1, 4, 128>}, {pipeline_mode = #tpu.pipeline_mode<synchronous>, transform_indices = @transform_13, window_bounds = array<i64: 2, 32>}]} {
    %c0_i32 = arith.constant 0 : i32
    %0 = arith.cmpi eq, %arg0, %c0_i32 : i32
    %1 = arith.extui %0 : i1 to i32
    %c0_i32_0 = arith.constant 0 : i32
    %2 = arith.cmpi ne, %1, %c0_i32_0 : i32
    scf.if %2 {
      %c0_92 = arith.constant 0 : index
      %c0_93 = arith.constant 0 : index
      %254 = vector.load %arg1[%c0_92, %c0_93] : memref<16x32xf32, #tpu.memory_space<vmem>>, vector<16x32xf32>
      %c0_94 = arith.constant 0 : index
      %c0_95 = arith.constant 0 : index
      %255 = vector.load %arg3[%c0_94, %c0_95] : memref<2x32xf32, #tpu.memory_space<vmem>>, vector<1x32xf32>
      %c1_96 = arith.constant 1 : index
      %c0_97 = arith.constant 0 : index
      %256 = vector.load %arg3[%c1_96, %c0_97] : memref<2x32xf32, #tpu.memory_space<vmem>>, vector<1x32xf32>
      %cst_98 = arith.constant dense<0.000000e+00> : vector<16xf32>
      %257 = vector.multi_reduction <add>, %254, %cst_98 [1] : vector<16x32xf32> to vector<16xf32>
      %258 = vector.shape_cast %257 : vector<16xf32> to vector<16x1xf32>
      %cst_99 = arith.constant 3.200000e+01 : f32
      %259 = vector.broadcast %cst_99 : f32 to vector<16x1xf32>
      %260 = arith.divf %258, %259 : vector<16x1xf32>
      %261 = vector.broadcast %260 : vector<16x1xf32> to vector<16x32xf32>
      %262 = arith.subf %254, %261 : vector<16x32xf32>
      %263 = arith.mulf %262, %262 : vector<16x32xf32>
      %cst_100 = arith.constant dense<0.000000e+00> : vector<16xf32>
      %264 = vector.multi_reduction <add>, %263, %cst_100 [1] : vector<16x32xf32> to vector<16xf32>
      %265 = vector.shape_cast %264 : vector<16xf32> to vector<16x1xf32>
      %cst_101 = arith.constant 3.200000e+01 : f32
      %266 = vector.broadcast %cst_101 : f32 to vector<16x1xf32>
      %267 = arith.divf %265, %266 : vector<16x1xf32>
      %268 = vector.broadcast %260 : vector<16x1xf32> to vector<16x32xf32>
      %269 = arith.subf %254, %268 : vector<16x32xf32>
      %cst_102 = arith.constant 9.99999996E-13 : f32
      %270 = vector.broadcast %cst_102 : f32 to vector<16x1xf32>
      %271 = arith.addf %267, %270 : vector<16x1xf32>
      %272 = math.sqrt %271 : vector<16x1xf32>
      %273 = vector.broadcast %272 : vector<16x1xf32> to vector<16x32xf32>
      %274 = arith.divf %269, %273 : vector<16x32xf32>
      %275 = vector.broadcast %255 : vector<1x32xf32> to vector<16x32xf32>
      %276 = arith.mulf %275, %274 : vector<16x32xf32>
      %277 = vector.broadcast %256 : vector<1x32xf32> to vector<16x32xf32>
      %278 = arith.addf %276, %277 : vector<16x32xf32>
      %c0_103 = arith.constant 0 : index
      %c0_104 = arith.constant 0 : index
      %279 = vector.load %arg15[%c0_103, %c0_104] : memref<16x32xf32, #tpu.memory_space<vmem>>, vector<16x32xf32>
      tpu.vector_store %arg15[%c0_103, %c0_104], %278 {strides = array<i32>} : memref<16x32xf32, #tpu.memory_space<vmem>>, vector<16x32xf32>,
    } else {
    }
    %c0 = arith.constant 0 : index
    %c0_1 = arith.constant 0 : index
    %3 = vector.load %arg15[%c0, %c0_1] : memref<16x32xf32, #tpu.memory_space<vmem>>, vector<16x32xf32>
    %c0_2 = arith.constant 0 : index
    %c0_3 = arith.constant 0 : index
    %c0_4 = arith.constant 0 : index
    %4 = vector.load %arg4[%c0_2, %c0_3, %c0_4] : memref<1x32x96xf32, #tpu.memory_space<vmem>>, vector<1x32x96xf32>
    %5 = vector.shape_cast %4 : vector<1x32x96xf32> to vector<32x96xf32>
    %cst = arith.constant dense<0.000000e+00> : vector<16x96xf32>
    %6 = tpu.matmul %3, %5, %cst {dimension_numbers = #tpu.dot_dimension_numbers<[1], [0], [0], [1], [0, 0, 1, 1], [], []>} : vector<16x32xf32>, vector<32x96xf32>, vector<16x96xf32> -> vector<16x96xf32>
    %c0_5 = arith.constant 0 : index
    %c0_6 = arith.constant 0 : index
    %c0_7 = arith.constant 0 : index
    %7 = vector.load %arg5[%c0_5, %c0_6, %c0_7] : memref<1x1x96xf32, #tpu.memory_space<vmem>>, vector<1x1x96xf32>
    %8 = vector.shape_cast %7 : vector<1x1x96xf32> to vector<1x96xf32>
    %9 = vector.broadcast %8 : vector<1x96xf32> to vector<16x96xf32>
    %10 = arith.addf %6, %9 : vector<16x96xf32>
    %11 = vector.extract_strided_slice %10 {offsets = [0, 0], sizes = [8, 96], strides = [1, 1]} : vector<16x96xf32> to vector<8x96xf32>
    %c0_8 = arith.constant 0 : index
    %c0_9 = arith.constant 0 : index
    %12 = vector.load %arg2[%c0_8, %c0_9] : memref<2x8xf32, #tpu.memory_space<vmem>>, vector<1x8xf32>
    %13 = vector.extract_strided_slice %11 {offsets = [0, 0], sizes = [8, 8], strides = [1, 1]} : vector<8x96xf32> to vector<8x8xf32>
    %14 = vector.extract_strided_slice %11 {offsets = [0, 32], sizes = [8, 8], strides = [1, 1]} : vector<8x96xf32> to vector<8x8xf32>
    %15 = vector.extract_strided_slice %11 {offsets = [0, 64], sizes = [8, 8], strides = [1, 1]} : vector<8x96xf32> to vector<8x8xf32>
    %cst_10 = arith.constant dense<0.000000e+00> : vector<8x8xf32>
    %16 = tpu.matmul %13, %14, %cst_10 {dimension_numbers = #tpu.dot_dimension_numbers<[1], [1], [0], [0], [0, 0, 1, 0], [], []>} : vector<8x8xf32>, vector<8x8xf32>, vector<8x8xf32> -> vector<8x8xf32>
    %17 = vector.broadcast %12 : vector<1x8xf32> to vector<8x8xf32>
    %18 = arith.addf %16, %17 : vector<8x8xf32>
    %cst_11 = arith.constant dense<0xFF800000> : vector<8xf32>
    %19 = vector.multi_reduction <maximumf>, %18, %cst_11 [1] : vector<8x8xf32> to vector<8xf32>
    %20 = vector.shape_cast %19 : vector<8xf32> to vector<8x1xf32>
    %21 = vector.broadcast %20 : vector<8x1xf32> to vector<8x8xf32>
    %22 = arith.subf %18, %21 : vector<8x8xf32>
    %23 = math.exp %22 : vector<8x8xf32>
    %cst_12 = arith.constant dense<0.000000e+00> : vector<8xf32>
    %24 = vector.multi_reduction <add>, %23, %cst_12 [1] : vector<8x8xf32> to vector<8xf32>
    %25 = vector.shape_cast %24 : vector<8xf32> to vector<8x1xf32>
    %26 = tpu.reciprocal %25 {approx = true} : vector<8x1xf32> -> vector<8x1xf32>
    %27 = vector.broadcast %26 : vector<8x1xf32> to vector<8x8xf32>
    %28 = arith.mulf %23, %27 : vector<8x8xf32>
    %cst_13 = arith.constant dense<0.000000e+00> : vector<8x8xf32>
    %29 = tpu.matmul %28, %15, %cst_13 {dimension_numbers = #tpu.dot_dimension_numbers<[1], [0], [0], [1], [0, 0, 1, 1], [], []>} : vector<8x8xf32>, vector<8x8xf32>, vector<8x8xf32> -> vector<8x8xf32>
    %30 = vector.extract_strided_slice %11 {offsets = [0, 8], sizes = [8, 8], strides = [1, 1]} : vector<8x96xf32> to vector<8x8xf32>
    %31 = vector.extract_strided_slice %11 {offsets = [0, 40], sizes = [8, 8], strides = [1, 1]} : vector<8x96xf32> to vector<8x8xf32>
    %32 = vector.extract_strided_slice %11 {offsets = [0, 72], sizes = [8, 8], strides = [1, 1]} : vector<8x96xf32> to vector<8x8xf32>
    %cst_14 = arith.constant dense<0.000000e+00> : vector<8x8xf32>
    %33 = tpu.matmul %30, %31, %cst_14 {dimension_numbers = #tpu.dot_dimension_numbers<[1], [1], [0], [0], [0, 0, 1, 0], [], []>} : vector<8x8xf32>, vector<8x8xf32>, vector<8x8xf32> -> vector<8x8xf32>
    %34 = vector.broadcast %12 : vector<1x8xf32> to vector<8x8xf32>
    %35 = arith.addf %33, %34 : vector<8x8xf32>
    %cst_15 = arith.constant dense<0xFF800000> : vector<8xf32>
    %36 = vector.multi_reduction <maximumf>, %35, %cst_15 [1] : vector<8x8xf32> to vector<8xf32>
    %37 = vector.shape_cast %36 : vector<8xf32> to vector<8x1xf32>
    %38 = vector.broadcast %37 : vector<8x1xf32> to vector<8x8xf32>
    %39 = arith.subf %35, %38 : vector<8x8xf32>
    %40 = math.exp %39 : vector<8x8xf32>
    %cst_16 = arith.constant dense<0.000000e+00> : vector<8xf32>
    %41 = vector.multi_reduction <add>, %40, %cst_16 [1] : vector<8x8xf32> to vector<8xf32>
    %42 = vector.shape_cast %41 : vector<8xf32> to vector<8x1xf32>
    %43 = tpu.reciprocal %42 {approx = true} : vector<8x1xf32> -> vector<8x1xf32>
    %44 = vector.broadcast %43 : vector<8x1xf32> to vector<8x8xf32>
    %45 = arith.mulf %40, %44 : vector<8x8xf32>
    %cst_17 = arith.constant dense<0.000000e+00> : vector<8x8xf32>
    %46 = tpu.matmul %45, %32, %cst_17 {dimension_numbers = #tpu.dot_dimension_numbers<[1], [0], [0], [1], [0, 0, 1, 1], [], []>} : vector<8x8xf32>, vector<8x8xf32>, vector<8x8xf32> -> vector<8x8xf32>
    %47 = vector.extract_strided_slice %11 {offsets = [0, 16], sizes = [8, 8], strides = [1, 1]} : vector<8x96xf32> to vector<8x8xf32>
    %48 = vector.extract_strided_slice %11 {offsets = [0, 48], sizes = [8, 8], strides = [1, 1]} : vector<8x96xf32> to vector<8x8xf32>
    %49 = vector.extract_strided_slice %11 {offsets = [0, 80], sizes = [8, 8], strides = [1, 1]} : vector<8x96xf32> to vector<8x8xf32>
    %cst_18 = arith.constant dense<0.000000e+00> : vector<8x8xf32>
    %50 = tpu.matmul %47, %48, %cst_18 {dimension_numbers = #tpu.dot_dimension_numbers<[1], [1], [0], [0], [0, 0, 1, 0], [], []>} : vector<8x8xf32>, vector<8x8xf32>, vector<8x8xf32> -> vector<8x8xf32>
    %51 = vector.broadcast %12 : vector<1x8xf32> to vector<8x8xf32>
    %52 = arith.addf %50, %51 : vector<8x8xf32>
    %cst_19 = arith.constant dense<0xFF800000> : vector<8xf32>
    %53 = vector.multi_reduction <maximumf>, %52, %cst_19 [1] : vector<8x8xf32> to vector<8xf32>
    %54 = vector.shape_cast %53 : vector<8xf32> to vector<8x1xf32>
    %55 = vector.broadcast %54 : vector<8x1xf32> to vector<8x8xf32>
    %56 = arith.subf %52, %55 : vector<8x8xf32>
    %57 = math.exp %56 : vector<8x8xf32>
    %cst_20 = arith.constant dense<0.000000e+00> : vector<8xf32>
    %58 = vector.multi_reduction <add>, %57, %cst_20 [1] : vector<8x8xf32> to vector<8xf32>
    %59 = vector.shape_cast %58 : vector<8xf32> to vector<8x1xf32>
    %60 = tpu.reciprocal %59 {approx = true} : vector<8x1xf32> -> vector<8x1xf32>
    %61 = vector.broadcast %60 : vector<8x1xf32> to vector<8x8xf32>
    %62 = arith.mulf %57, %61 : vector<8x8xf32>
    %cst_21 = arith.constant dense<0.000000e+00> : vector<8x8xf32>
    %63 = tpu.matmul %62, %49, %cst_21 {dimension_numbers = #tpu.dot_dimension_numbers<[1], [0], [0], [1], [0, 0, 1, 1], [], []>} : vector<8x8xf32>, vector<8x8xf32>, vector<8x8xf32> -> vector<8x8xf32>
    %64 = vector.extract_strided_slice %11 {offsets = [0, 24], sizes = [8, 8], strides = [1, 1]} : vector<8x96xf32> to vector<8x8xf32>
    %65 = vector.extract_strided_slice %11 {offsets = [0, 56], sizes = [8, 8], strides = [1, 1]} : vector<8x96xf32> to vector<8x8xf32>
    %66 = vector.extract_strided_slice %11 {offsets = [0, 88], sizes = [8, 8], strides = [1, 1]} : vector<8x96xf32> to vector<8x8xf32>
    %cst_22 = arith.constant dense<0.000000e+00> : vector<8x8xf32>
    %67 = tpu.matmul %64, %65, %cst_22 {dimension_numbers = #tpu.dot_dimension_numbers<[1], [1], [0], [0], [0, 0, 1, 0], [], []>} : vector<8x8xf32>, vector<8x8xf32>, vector<8x8xf32> -> vector<8x8xf32>
    %68 = vector.broadcast %12 : vector<1x8xf32> to vector<8x8xf32>
    %69 = arith.addf %67, %68 : vector<8x8xf32>
    %cst_23 = arith.constant dense<0xFF800000> : vector<8xf32>
    %70 = vector.multi_reduction <maximumf>, %69, %cst_23 [1] : vector<8x8xf32> to vector<8xf32>
    %71 = vector.shape_cast %70 : vector<8xf32> to vector<8x1xf32>
    %72 = vector.broadcast %71 : vector<8x1xf32> to vector<8x8xf32>
    %73 = arith.subf %69, %72 : vector<8x8xf32>
    %74 = math.exp %73 : vector<8x8xf32>
    %cst_24 = arith.constant dense<0.000000e+00> : vector<8xf32>
    %75 = vector.multi_reduction <add>, %74, %cst_24 [1] : vector<8x8xf32> to vector<8xf32>
    %76 = vector.shape_cast %75 : vector<8xf32> to vector<8x1xf32>
    %77 = tpu.reciprocal %76 {approx = true} : vector<8x1xf32> -> vector<8x1xf32>
    %78 = vector.broadcast %77 : vector<8x1xf32> to vector<8x8xf32>
    %79 = arith.mulf %74, %78 : vector<8x8xf32>
    %cst_25 = arith.constant dense<0.000000e+00> : vector<8x8xf32>
    %80 = tpu.matmul %79, %66, %cst_25 {dimension_numbers = #tpu.dot_dimension_numbers<[1], [0], [0], [1], [0, 0, 1, 1], [], []>} : vector<8x8xf32>, vector<8x8xf32>, vector<8x8xf32> -> vector<8x8xf32>
    %81 = tpu.concatenate %29, %46, %63, %80 in 1 : vector<8x8xf32>, vector<8x8xf32>, vector<8x8xf32>, vector<8x8xf32> -> vector<8x32xf32>
    %82 = vector.extract_strided_slice %10 {offsets = [8, 0], sizes = [8, 96], strides = [1, 1]} : vector<16x96xf32> to vector<8x96xf32>
    %c1 = arith.constant 1 : index
    %c0_26 = arith.constant 0 : index
    %83 = vector.load %arg2[%c1, %c0_26] : memref<2x8xf32, #tpu.memory_space<vmem>>, vector<1x8xf32>
    %84 = vector.extract_strided_slice %82 {offsets = [0, 0], sizes = [8, 8], strides = [1, 1]} : vector<8x96xf32> to vector<8x8xf32>
    %85 = vector.extract_strided_slice %82 {offsets = [0, 32], sizes = [8, 8], strides = [1, 1]} : vector<8x96xf32> to vector<8x8xf32>
    %86 = vector.extract_strided_slice %82 {offsets = [0, 64], sizes = [8, 8], strides = [1, 1]} : vector<8x96xf32> to vector<8x8xf32>
    %cst_27 = arith.constant dense<0.000000e+00> : vector<8x8xf32>
    %87 = tpu.matmul %84, %85, %cst_27 {dimension_numbers = #tpu.dot_dimension_numbers<[1], [1], [0], [0], [0, 0, 1, 0], [], []>} : vector<8x8xf32>, vector<8x8xf32>, vector<8x8xf32> -> vector<8x8xf32>
    %88 = vector.broadcast %83 : vector<1x8xf32> to vector<8x8xf32>
    %89 = arith.addf %87, %88 : vector<8x8xf32>
    %cst_28 = arith.constant dense<0xFF800000> : vector<8xf32>
    %90 = vector.multi_reduction <maximumf>, %89, %cst_28 [1] : vector<8x8xf32> to vector<8xf32>
    %91 = vector.shape_cast %90 : vector<8xf32> to vector<8x1xf32>
    %92 = vector.broadcast %91 : vector<8x1xf32> to vector<8x8xf32>
    %93 = arith.subf %89, %92 : vector<8x8xf32>
    %94 = math.exp %93 : vector<8x8xf32>
    %cst_29 = arith.constant dense<0.000000e+00> : vector<8xf32>
    %95 = vector.multi_reduction <add>, %94, %cst_29 [1] : vector<8x8xf32> to vector<8xf32>
    %96 = vector.shape_cast %95 : vector<8xf32> to vector<8x1xf32>
    %97 = tpu.reciprocal %96 {approx = true} : vector<8x1xf32> -> vector<8x1xf32>
    %98 = vector.broadcast %97 : vector<8x1xf32> to vector<8x8xf32>
    %99 = arith.mulf %94, %98 : vector<8x8xf32>
    %cst_30 = arith.constant dense<0.000000e+00> : vector<8x8xf32>
    %100 = tpu.matmul %99, %86, %cst_30 {dimension_numbers = #tpu.dot_dimension_numbers<[1], [0], [0], [1], [0, 0, 1, 1], [], []>} : vector<8x8xf32>, vector<8x8xf32>, vector<8x8xf32> -> vector<8x8xf32>
    %101 = vector.extract_strided_slice %82 {offsets = [0, 8], sizes = [8, 8], strides = [1, 1]} : vector<8x96xf32> to vector<8x8xf32>
    %102 = vector.extract_strided_slice %82 {offsets = [0, 40], sizes = [8, 8], strides = [1, 1]} : vector<8x96xf32> to vector<8x8xf32>
    %103 = vector.extract_strided_slice %82 {offsets = [0, 72], sizes = [8, 8], strides = [1, 1]} : vector<8x96xf32> to vector<8x8xf32>
    %cst_31 = arith.constant dense<0.000000e+00> : vector<8x8xf32>
    %104 = tpu.matmul %101, %102, %cst_31 {dimension_numbers = #tpu.dot_dimension_numbers<[1], [1], [0], [0], [0, 0, 1, 0], [], []>} : vector<8x8xf32>, vector<8x8xf32>, vector<8x8xf32> -> vector<8x8xf32>
    %105 = vector.broadcast %83 : vector<1x8xf32> to vector<8x8xf32>
    %106 = arith.addf %104, %105 : vector<8x8xf32>
    %cst_32 = arith.constant dense<0xFF800000> : vector<8xf32>
    %107 = vector.multi_reduction <maximumf>, %106, %cst_32 [1] : vector<8x8xf32> to vector<8xf32>
    %108 = vector.shape_cast %107 : vector<8xf32> to vector<8x1xf32>
    %109 = vector.broadcast %108 : vector<8x1xf32> to vector<8x8xf32>
    %110 = arith.subf %106, %109 : vector<8x8xf32>
    %111 = math.exp %110 : vector<8x8xf32>
    %cst_33 = arith.constant dense<0.000000e+00> : vector<8xf32>
    %112 = vector.multi_reduction <add>, %111, %cst_33 [1] : vector<8x8xf32> to vector<8xf32>
    %113 = vector.shape_cast %112 : vector<8xf32> to vector<8x1xf32>
    %114 = tpu.reciprocal %113 {approx = true} : vector<8x1xf32> -> vector<8x1xf32>
    %115 = vector.broadcast %114 : vector<8x1xf32> to vector<8x8xf32>
    %116 = arith.mulf %111, %115 : vector<8x8xf32>
    %cst_34 = arith.constant dense<0.000000e+00> : vector<8x8xf32>
    %117 = tpu.matmul %116, %103, %cst_34 {dimension_numbers = #tpu.dot_dimension_numbers<[1], [0], [0], [1], [0, 0, 1, 1], [], []>} : vector<8x8xf32>, vector<8x8xf32>, vector<8x8xf32> -> vector<8x8xf32>
    %118 = vector.extract_strided_slice %82 {offsets = [0, 16], sizes = [8, 8], strides = [1, 1]} : vector<8x96xf32> to vector<8x8xf32>
    %119 = vector.extract_strided_slice %82 {offsets = [0, 48], sizes = [8, 8], strides = [1, 1]} : vector<8x96xf32> to vector<8x8xf32>
    %120 = vector.extract_strided_slice %82 {offsets = [0, 80], sizes = [8, 8], strides = [1, 1]} : vector<8x96xf32> to vector<8x8xf32>
    %cst_35 = arith.constant dense<0.000000e+00> : vector<8x8xf32>
    %121 = tpu.matmul %118, %119, %cst_35 {dimension_numbers = #tpu.dot_dimension_numbers<[1], [1], [0], [0], [0, 0, 1, 0], [], []>} : vector<8x8xf32>, vector<8x8xf32>, vector<8x8xf32> -> vector<8x8xf32>
    %122 = vector.broadcast %83 : vector<1x8xf32> to vector<8x8xf32>
    %123 = arith.addf %121, %122 : vector<8x8xf32>
    %cst_36 = arith.constant dense<0xFF800000> : vector<8xf32>
    %124 = vector.multi_reduction <maximumf>, %123, %cst_36 [1] : vector<8x8xf32> to vector<8xf32>
    %125 = vector.shape_cast %124 : vector<8xf32> to vector<8x1xf32>
    %126 = vector.broadcast %125 : vector<8x1xf32> to vector<8x8xf32>
    %127 = arith.subf %123, %126 : vector<8x8xf32>
    %128 = math.exp %127 : vector<8x8xf32>
    %cst_37 = arith.constant dense<0.000000e+00> : vector<8xf32>
    %129 = vector.multi_reduction <add>, %128, %cst_37 [1] : vector<8x8xf32> to vector<8xf32>
    %130 = vector.shape_cast %129 : vector<8xf32> to vector<8x1xf32>
    %131 = tpu.reciprocal %130 {approx = true} : vector<8x1xf32> -> vector<8x1xf32>
    %132 = vector.broadcast %131 : vector<8x1xf32> to vector<8x8xf32>
    %133 = arith.mulf %128, %132 : vector<8x8xf32>
    %cst_38 = arith.constant dense<0.000000e+00> : vector<8x8xf32>
    %134 = tpu.matmul %133, %120, %cst_38 {dimension_numbers = #tpu.dot_dimension_numbers<[1], [0], [0], [1], [0, 0, 1, 1], [], []>} : vector<8x8xf32>, vector<8x8xf32>, vector<8x8xf32> -> vector<8x8xf32>
    %135 = vector.extract_strided_slice %82 {offsets = [0, 24], sizes = [8, 8], strides = [1, 1]} : vector<8x96xf32> to vector<8x8xf32>
    %136 = vector.extract_strided_slice %82 {offsets = [0, 56], sizes = [8, 8], strides = [1, 1]} : vector<8x96xf32> to vector<8x8xf32>
    %137 = vector.extract_strided_slice %82 {offsets = [0, 88], sizes = [8, 8], strides = [1, 1]} : vector<8x96xf32> to vector<8x8xf32>
    %cst_39 = arith.constant dense<0.000000e+00> : vector<8x8xf32>
    %138 = tpu.matmul %135, %136, %cst_39 {dimension_numbers = #tpu.dot_dimension_numbers<[1], [1], [0], [0], [0, 0, 1, 0], [], []>} : vector<8x8xf32>, vector<8x8xf32>, vector<8x8xf32> -> vector<8x8xf32>
    %139 = vector.broadcast %83 : vector<1x8xf32> to vector<8x8xf32>
    %140 = arith.addf %138, %139 : vector<8x8xf32>
    %cst_40 = arith.constant dense<0xFF800000> : vector<8xf32>
    %141 = vector.multi_reduction <maximumf>, %140, %cst_40 [1] : vector<8x8xf32> to vector<8xf32>
    %142 = vector.shape_cast %141 : vector<8xf32> to vector<8x1xf32>
    %143 = vector.broadcast %142 : vector<8x1xf32> to vector<8x8xf32>
    %144 = arith.subf %140, %143 : vector<8x8xf32>
    %145 = math.exp %144 : vector<8x8xf32>
    %cst_41 = arith.constant dense<0.000000e+00> : vector<8xf32>
    %146 = vector.multi_reduction <add>, %145, %cst_41 [1] : vector<8x8xf32> to vector<8xf32>
    %147 = vector.shape_cast %146 : vector<8xf32> to vector<8x1xf32>
    %148 = tpu.reciprocal %147 {approx = true} : vector<8x1xf32> -> vector<8x1xf32>
    %149 = vector.broadcast %148 : vector<8x1xf32> to vector<8x8xf32>
    %150 = arith.mulf %145, %149 : vector<8x8xf32>
    %cst_42 = arith.constant dense<0.000000e+00> : vector<8x8xf32>
    %151 = tpu.matmul %150, %137, %cst_42 {dimension_numbers = #tpu.dot_dimension_numbers<[1], [0], [0], [1], [0, 0, 1, 1], [], []>} : vector<8x8xf32>, vector<8x8xf32>, vector<8x8xf32> -> vector<8x8xf32>
    %152 = tpu.concatenate %100, %117, %134, %151 in 1 : vector<8x8xf32>, vector<8x8xf32>, vector<8x8xf32>, vector<8x8xf32> -> vector<8x32xf32>
    %153 = tpu.concatenate %81, %152 in 0 : vector<8x32xf32>, vector<8x32xf32> -> vector<16x32xf32>
    %c0_43 = arith.constant 0 : index
    %c0_44 = arith.constant 0 : index
    %c0_45 = arith.constant 0 : index
    %154 = vector.load %arg6[%c0_43, %c0_44, %c0_45] : memref<1x32x32xf32, #tpu.memory_space<vmem>>, vector<1x32x32xf32>
    %155 = vector.shape_cast %154 : vector<1x32x32xf32> to vector<32x32xf32>
    %cst_46 = arith.constant dense<0.000000e+00> : vector<16x32xf32>
    %156 = tpu.matmul %153, %155, %cst_46 {dimension_numbers = #tpu.dot_dimension_numbers<[1], [0], [0], [1], [0, 0, 1, 1], [], []>} : vector<16x32xf32>, vector<32x32xf32>, vector<16x32xf32> -> vector<16x32xf32>
    %c0_47 = arith.constant 0 : index
    %c0_48 = arith.constant 0 : index
    %c0_49 = arith.constant 0 : index
    %157 = vector.load %arg10[%c0_47, %c0_48, %c0_49] : memref<1x6x32xf32, #tpu.memory_space<vmem>>, vector<1x1x32xf32>
    %158 = vector.shape_cast %157 : vector<1x1x32xf32> to vector<1x32xf32>
    %159 = vector.broadcast %158 : vector<1x32xf32> to vector<16x32xf32>
    %160 = arith.addf %156, %159 : vector<16x32xf32>
    %161 = arith.addf %160, %3 : vector<16x32xf32>
    %c0_50 = arith.constant 0 : index
    %c1_51 = arith.constant 1 : index
    %c0_52 = arith.constant 0 : index
    %162 = vector.load %arg10[%c0_50, %c1_51, %c0_52] : memref<1x6x32xf32, #tpu.memory_space<vmem>>, vector<1x1x32xf32>
    %163 = vector.shape_cast %162 : vector<1x1x32xf32> to vector<1x32xf32>
    %c0_53 = arith.constant 0 : index
    %c2 = arith.constant 2 : index
    %c0_54 = arith.constant 0 : index
    %164 = vector.load %arg10[%c0_53, %c2, %c0_54] : memref<1x6x32xf32, #tpu.memory_space<vmem>>, vector<1x1x32xf32>
    %165 = vector.shape_cast %164 : vector<1x1x32xf32> to vector<1x32xf32>
    %cst_55 = arith.constant dense<0.000000e+00> : vector<16xf32>
    %166 = vector.multi_reduction <add>, %161, %cst_55 [1] : vector<16x32xf32> to vector<16xf32>
    %167 = vector.shape_cast %166 : vector<16xf32> to vector<16x1xf32>
    %cst_56 = arith.constant 3.200000e+01 : f32
    %168 = vector.broadcast %cst_56 : f32 to vector<16x1xf32>
    %169 = arith.divf %167, %168 : vector<16x1xf32>
    %170 = vector.broadcast %169 : vector<16x1xf32> to vector<16x32xf32>
    %171 = arith.subf %161, %170 : vector<16x32xf32>
    %172 = arith.mulf %171, %171 : vector<16x32xf32>
    %cst_57 = arith.constant dense<0.000000e+00> : vector<16xf32>
    %173 = vector.multi_reduction <add>, %172, %cst_57 [1] : vector<16x32xf32> to vector<16xf32>
    %174 = vector.shape_cast %173 : vector<16xf32> to vector<16x1xf32>
    %cst_58 = arith.constant 3.200000e+01 : f32
    %175 = vector.broadcast %cst_58 : f32 to vector<16x1xf32>
    %176 = arith.divf %174, %175 : vector<16x1xf32>
    %177 = vector.broadcast %169 : vector<16x1xf32> to vector<16x32xf32>
    %178 = arith.subf %161, %177 : vector<16x32xf32>
    %cst_59 = arith.constant 9.99999996E-13 : f32
    %179 = vector.broadcast %cst_59 : f32 to vector<16x1xf32>
    %180 = arith.addf %176, %179 : vector<16x1xf32>
    %181 = math.sqrt %180 : vector<16x1xf32>
    %182 = vector.broadcast %181 : vector<16x1xf32> to vector<16x32xf32>
    %183 = arith.divf %178, %182 : vector<16x32xf32>
    %184 = vector.broadcast %163 : vector<1x32xf32> to vector<16x32xf32>
    %185 = arith.mulf %184, %183 : vector<16x32xf32>
    %186 = vector.broadcast %165 : vector<1x32xf32> to vector<16x32xf32>
    %187 = arith.addf %185, %186 : vector<16x32xf32>
    %c0_60 = arith.constant 0 : index
    %c0_61 = arith.constant 0 : index
    %c0_62 = arith.constant 0 : index
    %188 = vector.load %arg7[%c0_60, %c0_61, %c0_62] : memref<1x32x64xf32, #tpu.memory_space<vmem>>, vector<1x32x64xf32>
    %189 = vector.shape_cast %188 : vector<1x32x64xf32> to vector<32x64xf32>
    %cst_63 = arith.constant dense<0.000000e+00> : vector<16x64xf32>
    %190 = tpu.matmul %187, %189, %cst_63 {dimension_numbers = #tpu.dot_dimension_numbers<[1], [0], [0], [1], [0, 0, 1, 1], [], []>} : vector<16x32xf32>, vector<32x64xf32>, vector<16x64xf32> -> vector<16x64xf32>
    %c0_64 = arith.constant 0 : index
    %c0_65 = arith.constant 0 : index
    %c0_66 = arith.constant 0 : index
    %191 = vector.load %arg8[%c0_64, %c0_65, %c0_66] : memref<1x1x64xf32, #tpu.memory_space<vmem>>, vector<1x1x64xf32>
    %192 = vector.shape_cast %191 : vector<1x1x64xf32> to vector<1x64xf32>
    %193 = vector.broadcast %192 : vector<1x64xf32> to vector<16x64xf32>
    %194 = arith.addf %190, %193 : vector<16x64xf32>
    %cst_67 = arith.constant 5.000000e-01 : f32
    %195 = vector.broadcast %cst_67 : f32 to vector<16x64xf32>
    %196 = arith.mulf %195, %194 : vector<16x64xf32>
    %cst_68 = arith.constant 4.471500e-02 : f32
    %197 = vector.broadcast %cst_68 : f32 to vector<16x64xf32>
    %198 = arith.mulf %197, %194 : vector<16x64xf32>
    %199 = arith.mulf %198, %194 : vector<16x64xf32>
    %200 = arith.mulf %199, %194 : vector<16x64xf32>
    %201 = arith.addf %194, %200 : vector<16x64xf32>
    %cst_69 = arith.constant 0.797884583 : f32
    %202 = vector.broadcast %cst_69 : f32 to vector<16x64xf32>
    %203 = arith.mulf %202, %201 : vector<16x64xf32>
    %204 = math.tanh %203 : vector<16x64xf32>
    %cst_70 = arith.constant 1.000000e+00 : f32
    %205 = vector.broadcast %cst_70 : f32 to vector<16x64xf32>
    %206 = arith.addf %205, %204 : vector<16x64xf32>
    %207 = arith.mulf %196, %206 : vector<16x64xf32>
    %c0_71 = arith.constant 0 : index
    %c0_72 = arith.constant 0 : index
    %c0_73 = arith.constant 0 : index
    %208 = vector.load %arg9[%c0_71, %c0_72, %c0_73] : memref<1x64x32xf32, #tpu.memory_space<vmem>>, vector<1x64x32xf32>
    %209 = vector.shape_cast %208 : vector<1x64x32xf32> to vector<64x32xf32>
    %cst_74 = arith.constant dense<0.000000e+00> : vector<16x32xf32>
    %210 = tpu.matmul %207, %209, %cst_74 {dimension_numbers = #tpu.dot_dimension_numbers<[1], [0], [0], [1], [0, 0, 1, 1], [], []>} : vector<16x64xf32>, vector<64x32xf32>, vector<16x32xf32> -> vector<16x32xf32>
    %c0_75 = arith.constant 0 : index
    %c3 = arith.constant 3 : index
    %c0_76 = arith.constant 0 : index
    %211 = vector.load %arg10[%c0_75, %c3, %c0_76] : memref<1x6x32xf32, #tpu.memory_space<vmem>>, vector<1x1x32xf32>
    %212 = vector.shape_cast %211 : vector<1x1x32xf32> to vector<1x32xf32>
    %213 = vector.broadcast %212 : vector<1x32xf32> to vector<16x32xf32>
    %214 = arith.addf %210, %213 : vector<16x32xf32>
    %215 = arith.addf %214, %187 : vector<16x32xf32>
    %c0_77 = arith.constant 0 : index
    %c4 = arith.constant 4 : index
    %c0_78 = arith.constant 0 : index
    %216 = vector.load %arg10[%c0_77, %c4, %c0_78] : memref<1x6x32xf32, #tpu.memory_space<vmem>>, vector<1x1x32xf32>
    %217 = vector.shape_cast %216 : vector<1x1x32xf32> to vector<1x32xf32>
    %c0_79 = arith.constant 0 : index
    %c5 = arith.constant 5 : index
    %c0_80 = arith.constant 0 : index
    %218 = vector.load %arg10[%c0_79, %c5, %c0_80] : memref<1x6x32xf32, #tpu.memory_space<vmem>>, vector<1x1x32xf32>
    %219 = vector.shape_cast %218 : vector<1x1x32xf32> to vector<1x32xf32>
    %cst_81 = arith.constant dense<0.000000e+00> : vector<16xf32>
    %220 = vector.multi_reduction <add>, %215, %cst_81 [1] : vector<16x32xf32> to vector<16xf32>
    %221 = vector.shape_cast %220 : vector<16xf32> to vector<16x1xf32>
    %cst_82 = arith.constant 3.200000e+01 : f32
    %222 = vector.broadcast %cst_82 : f32 to vector<16x1xf32>
    %223 = arith.divf %221, %222 : vector<16x1xf32>
    %224 = vector.broadcast %223 : vector<16x1xf32> to vector<16x32xf32>
    %225 = arith.subf %215, %224 : vector<16x32xf32>
    %226 = arith.mulf %225, %225 : vector<16x32xf32>
    %cst_83 = arith.constant dense<0.000000e+00> : vector<16xf32>
    %227 = vector.multi_reduction <add>, %226, %cst_83 [1] : vector<16x32xf32> to vector<16xf32>
    %228 = vector.shape_cast %227 : vector<16xf32> to vector<16x1xf32>
    %cst_84 = arith.constant 3.200000e+01 : f32
    %229 = vector.broadcast %cst_84 : f32 to vector<16x1xf32>
    %230 = arith.divf %228, %229 : vector<16x1xf32>
    %231 = vector.broadcast %223 : vector<16x1xf32> to vector<16x32xf32>
    %232 = arith.subf %215, %231 : vector<16x32xf32>
    %cst_85 = arith.constant 9.99999996E-13 : f32
    %233 = vector.broadcast %cst_85 : f32 to vector<16x1xf32>
    %234 = arith.addf %230, %233 : vector<16x1xf32>
    %235 = math.sqrt %234 : vector<16x1xf32>
    %236 = vector.broadcast %235 : vector<16x1xf32> to vector<16x32xf32>
    %237 = arith.divf %232, %236 : vector<16x32xf32>
    %238 = vector.broadcast %217 : vector<1x32xf32> to vector<16x32xf32>
    %239 = arith.mulf %238, %237 : vector<16x32xf32>
    %240 = vector.broadcast %219 : vector<1x32xf32> to vector<16x32xf32>
    %241 = arith.addf %239, %240 : vector<16x32xf32>
    %c0_86 = arith.constant 0 : index
    %c0_87 = arith.constant 0 : index
    %242 = vector.load %arg15[%c0_86, %c0_87] : memref<16x32xf32, #tpu.memory_space<vmem>>, vector<16x32xf32>
    tpu.vector_store %arg15[%c0_86, %c0_87], %241 {strides = array<i32>} : memref<16x32xf32, #tpu.memory_space<vmem>>, vector<16x32xf32>,
    %243 = vector.extract_strided_slice %241 {offsets = [0, 0], sizes = [4, 32], strides = [1, 1]} : vector<16x32xf32> to vector<4x32xf32>
    %244 = vector.extract_strided_slice %241 {offsets = [4, 0], sizes = [4, 32], strides = [1, 1]} : vector<16x32xf32> to vector<4x32xf32>
    %245 = vector.extract_strided_slice %241 {offsets = [8, 0], sizes = [4, 32], strides = [1, 1]} : vector<16x32xf32> to vector<4x32xf32>
    %246 = vector.extract_strided_slice %241 {offsets = [12, 0], sizes = [4, 32], strides = [1, 1]} : vector<16x32xf32> to vector<4x32xf32>
    %247 = tpu.concatenate %243, %244, %245, %246 in 1 : vector<4x32xf32>, vector<4x32xf32>, vector<4x32xf32>, vector<4x32xf32> -> vector<4x128xf32>
    %c0_88 = arith.constant 0 : index
    %c0_89 = arith.constant 0 : index
    %c0_90 = arith.constant 0 : index
    %248 = vector.load %arg13[%c0_88, %c0_89, %c0_90] : memref<1x4x128xf32, #tpu.memory_space<vmem>>, vector<1x4x128xf32>
    %249 = vector.shape_cast %248 : vector<1x4x128xf32> to vector<4x128xf32>
    %250 = vector.shape_cast %247 : vector<4x128xf32> to vector<1x4x128xf32>
    tpu.vector_store %arg13[%c0_88, %c0_89, %c0_90], %250 {strides = array<i32>} : memref<1x4x128xf32, #tpu.memory_space<vmem>>, vector<1x4x128xf32>,
    %c1_i32 = arith.constant 1 : i32
    %251 = arith.cmpi eq, %arg0, %c1_i32 : i32
    %252 = arith.extui %251 : i1 to i32
    %c0_i32_91 = arith.constant 0 : i32
    %253 = arith.cmpi ne, %252, %c0_i32_91 : i32
    scf.if %253 {
      %254 = vector.extract_strided_slice %241 {offsets = [0, 0], sizes = [1, 32], strides = [1, 1]} : vector<16x32xf32> to vector<1x32xf32>
      %255 = vector.extract_strided_slice %241 {offsets = [8, 0], sizes = [1, 32], strides = [1, 1]} : vector<16x32xf32> to vector<1x32xf32>
      %256 = tpu.concatenate %254, %255 in 0 : vector<1x32xf32>, vector<1x32xf32> -> vector<2x32xf32>
      %c0_92 = arith.constant 0 : index
      %c0_93 = arith.constant 0 : index
      %257 = vector.load %arg11[%c0_92, %c0_93] : memref<32x32xf32, #tpu.memory_space<vmem>>, vector<32x32xf32>
      %cst_94 = arith.constant dense<0.000000e+00> : vector<2x32xf32>
      %258 = tpu.matmul %256, %257, %cst_94 {dimension_numbers = #tpu.dot_dimension_numbers<[1], [0], [0], [1], [0, 0, 1, 1], [], []>} : vector<2x32xf32>, vector<32x32xf32>, vector<2x32xf32> -> vector<2x32xf32>
      %c0_95 = arith.constant 0 : index
      %c0_96 = arith.constant 0 : index
      %259 = vector.load %arg12[%c0_95, %c0_96] : memref<1x32xf32, #tpu.memory_space<vmem>>, vector<1x32xf32>
      %260 = vector.broadcast %259 : vector<1x32xf32> to vector<2x32xf32>
      %261 = arith.addf %258, %260 : vector<2x32xf32>
      %262 = math.tanh %261 : vector<2x32xf32>
      %c0_97 = arith.constant 0 : index
      %c0_98 = arith.constant 0 : index
      %263 = vector.load %arg14[%c0_97, %c0_98] : memref<2x32xf32, #tpu.memory_space<vmem>>, vector<2x32xf32>
      tpu.vector_store %arg14[%c0_97, %c0_98], %262 {strides = array<i32>} : memref<2x32xf32, #tpu.memory_space<vmem>>, vector<2x32xf32>,
    } else {
    }
    return
  }
  func.func @transform_0(%arg0: i32) -> (i32, i32) {
    %c0_i32 = arith.constant 0 : i32
    %c0_i32_0 = arith.constant 0 : i32
    %c0_i32_1 = arith.constant 0 : i32
    return %c0_i32, %c0_i32_0 : i32, i32
  }
  func.func @transform_1(%arg0: i32) -> (i32, i32) {
    %c0_i32 = arith.constant 0 : i32
    %c0_i32_0 = arith.constant 0 : i32
    %c0_i32_1 = arith.constant 0 : i32
    return %c0_i32, %c0_i32_0 : i32, i32
  }
  func.func @transform_2(%arg0: i32) -> (i32, i32) {
    %c0_i32 = arith.constant 0 : i32
    %c0_i32_0 = arith.constant 0 : i32
    %c0_i32_1 = arith.constant 0 : i32
    return %c0_i32, %c0_i32_0 : i32, i32
  }
  func.func @transform_3(%arg0: i32) -> (i32, i32, i32) {
    %c0_i32 = arith.constant 0 : i32
    %c0_i32_0 = arith.constant 0 : i32
    %c0_i32_1 = arith.constant 0 : i32
    return %arg0, %c0_i32, %c0_i32_0 : i32, i32, i32
  }
  func.func @transform_4(%arg0: i32) -> (i32, i32, i32) {
    %c0_i32 = arith.constant 0 : i32
    %c0_i32_0 = arith.constant 0 : i32
    %c0_i32_1 = arith.constant 0 : i32
    return %arg0, %c0_i32, %c0_i32_0 : i32, i32, i32
  }
  func.func @transform_5(%arg0: i32) -> (i32, i32, i32) {
    %c0_i32 = arith.constant 0 : i32
    %c0_i32_0 = arith.constant 0 : i32
    %c0_i32_1 = arith.constant 0 : i32
    return %arg0, %c0_i32, %c0_i32_0 : i32, i32, i32
  }
  func.func @transform_6(%arg0: i32) -> (i32, i32, i32) {
    %c0_i32 = arith.constant 0 : i32
    %c0_i32_0 = arith.constant 0 : i32
    %c0_i32_1 = arith.constant 0 : i32
    return %arg0, %c0_i32, %c0_i32_0 : i32, i32, i32
  }
  func.func @transform_7(%arg0: i32) -> (i32, i32, i32) {
    %c0_i32 = arith.constant 0 : i32
    %c0_i32_0 = arith.constant 0 : i32
    %c0_i32_1 = arith.constant 0 : i32
    return %arg0, %c0_i32, %c0_i32_0 : i32, i32, i32
  }
  func.func @transform_8(%arg0: i32) -> (i32, i32, i32) {
    %c0_i32 = arith.constant 0 : i32
    %c0_i32_0 = arith.constant 0 : i32
    %c0_i32_1 = arith.constant 0 : i32
    return %arg0, %c0_i32, %c0_i32_0 : i32, i32, i32
  }
  func.func @transform_9(%arg0: i32) -> (i32, i32, i32) {
    %c0_i32 = arith.constant 0 : i32
    %c0_i32_0 = arith.constant 0 : i32
    %c0_i32_1 = arith.constant 0 : i32
    return %arg0, %c0_i32, %c0_i32_0 : i32, i32, i32
  }
  func.func @transform_10(%arg0: i32) -> (i32, i32) {
    %c0_i32 = arith.constant 0 : i32
    %c0_i32_0 = arith.constant 0 : i32
    %c0_i32_1 = arith.constant 0 : i32
    return %c0_i32, %c0_i32_0 : i32, i32
  }
  func.func @transform_11(%arg0: i32) -> (i32, i32) {
    %c0_i32 = arith.constant 0 : i32
    %c0_i32_0 = arith.constant 0 : i32
    %c0_i32_1 = arith.constant 0 : i32
    return %c0_i32, %c0_i32_0 : i32, i32
  }
  func.func @transform_12(%arg0: i32) -> (i32, i32, i32) {
    %c0_i32 = arith.constant 0 : i32
    %c0_i32_0 = arith.constant 0 : i32
    %c0_i32_1 = arith.constant 0 : i32
    return %arg0, %c0_i32, %c0_i32_0 : i32, i32, i32
  }
  func.func @transform_13(%arg0: i32) -> (i32, i32) {
    %c0_i32 = arith.constant 0 : i32
    %c0_i32_0 = arith.constant 0 : i32
    %c0_i32_1 = arith.constant 0 : i32
    return %c0_i32, %c0_i32_0 : i32, i32
  }
}

</mosaic_0001>

<bundles_post_ra>
// kernel: tpu_custom_call.1
= control target key start
LH: loop header
LB: loop body
LE: loop exit
PB: predicated region body
PF: predicated region fallthrough
CT: control target
= control target key end

     0   :  { %s4182_s0 = inlined_call_operand.hbm [shape: f32[16,32], index: 0, kind: input, shape index: {}]   ;;  %s4183_s1 = inlined_call_operand.hbm [shape: f32[2,8], index: 1, kind: input, shape index: {}]   ;;  %s4184_s2 = inlined_call_operand.hbm [shape: f32[2,32], index: 2, kind: input, shape index: {}]   ;;  %s4185_s3 = inlined_call_operand.vmem [shape: f32[2,32,96], index: 3, kind: input, shape index: {}]   ;;  %s4186_s4 = inlined_call_operand.hbm [shape: f32[2,1,96], index: 4, kind: input, shape index: {}]   ;;  %s4187_s5 = inlined_call_operand.vmem [shape: f32[2,32,32], index: 5, kind: input, shape index: {}]   ;;  %s4188_s6 = inlined_call_operand.vmem [shape: f32[2,32,64], index: 6, kind: input, shape index: {}]   ;;  %s4189_s7 = inlined_call_operand.hbm [shape: f32[2,1,64], index: 7, kind: input, shape index: {}]   ;;  %s4190_s8 = inlined_call_operand.vmem [shape: f32[2,64,32], index: 8, kind: input, shape index: {}]   ;;  %s4191_s9 = inlined_call_operand.vmem [shape: f32[2,6,32], index: 9, kind: input, shape index: {}]   ;;  %s4192_s10 = inlined_call_operand.vmem [shape: f32[32,32], index: 10, kind: input, shape index: {}]   ;;  %s4193_s11 = inlined_call_operand.vmem [shape: f32[1,32], index: 11, kind: input, shape index: {}]   ;;  %s4194_s12 = inlined_call_operand.hbm [shape: f32[2,4,128], index: 12, kind: output, shape index: {0}]   ;;  %s4195_s13 = inlined_call_operand.hbm [shape: f32[2,32], index: 13, kind: output, shape index: {1}]  }
   0x1   :  { %4212 = sst [smem:[#allocation26_spill]] %s4182_s0 }
   0x2   :  { %4213 = sst [smem:[#allocation27_spill]] %s4183_s1 }
   0x3   :  { %4214 = sst [smem:[#allocation28_spill]] %s4184_s2 }
   0x4   :  { %4215 = sst [smem:[#allocation29_spill]] %s4193_s11 }
   0x5   :  { %4216 = sst [smem:[#allocation30_spill]] %s4194_s12 }
   0x6   :  { %4217 = sst [smem:[#allocation31_spill]] %s4195_s13 }
   0x7   :  { %19 = vsyncpa [#allocation4], 0 }
   0x8   :  { %20 = vsyncpa [#allocation7], 0 }
   0x9   :  { %21 = vsyncpa [#allocation10], 0 }
   0xa   :  { %23 = vsyncpa [#allocation10 + $0x1], 0 }
   0xb   :  { %24 = vsyncpa [#allocation5], 0 }
   0xc   :  { %26 = vsyncpa [#allocation5 + $0x1], 0 }
   0xd   :  { %27 = vsyncpa [#allocation14], 0  ;;  %s3668_s25 = smov 0   ;;  %s3670_s26 = smov 0  }
   0xe   :  { %s3672_s27 = smov 0   ;;  %s3674_s28 = smov 0  }
   0xf LB: > { %4218 = sst [smem:[#allocation20_spill]] %s3556_s25  ;;  %s3689_s29 = sadd.s32 4294967295, %s3568_s28   ;;  %s3568_s28 = sphi %s3674_s28, %s4261_s28   ;;  %s3564_s27 = sphi %s3672_s27, %s4265_s27   ;;  %s3560_s26 = sphi %s3670_s26, %s4264_s26   ;;  %s3556_s25 = sphi %s3668_s25, %s4263_s25  }
  0x10   : > { %4219 = sst [smem:[#allocation21_spill]] %s3568_s28  ;;  %s2874_s30 = sadd.s32 4294967294, %s3568_s28  }
  0x11   : > { %p142_p0 = scmp.ne.s32.totalorder %s3560_s26, %s3556_s25  ;;  %p4196_p1 = scmp.eq.s32.totalorder %s3689_s29, 0 }
  0x12   : > { %p344_p3 = scmp.eq.s32.totalorder %s2874_s30, 1  ;;  %p2875_p5 = scmp.ge.s32.totalorder %s3568_s28, 1 }
  0x13   : > { %p3698_p4 = por %p4196_p1, %p142_p0  ;;  %p372_p7 = scmp.lt.s32.totalorder %s3568_s28, 3 }
  0x14   : > { %p3703_p6 = por %p344_p3, %p142_p0  ;;  %s3570_s17 = smov [#allocation6]  }
  0x15   : > { %s4220_s14 = scalar_select %p3698_p4, 1, 0 }
  0x16   : > { %s4221_s15 = scalar_select %p3703_p6, 1, 0 }
  0x17   : > { %p3709_p9 = pnand %p2875_p5, %p372_p7  ;;  %s398_s18 = sshll.u32 %s3570_s17, 4  ;;  %s399_s18 = int_to_ptr.vmem [resolvable:$true] %s398_s18 }
  0x18   : > { %4222 = sst [smem:[#allocation22_spill]] %s4221_s15  ;;  %s3717_s19 = sadd.s32 1, %s3568_s28  }
  0x19   : > { %s4223_s16 = scalar_select %p3709_p9, 1, 0 }
  0x1a   : > { %p3184_p11 = pneg %p3709_p9  ;;  %4224 = sst [smem:[#allocation23_spill]] %s3717_s19 }
  0x1b   : > { %s126_s21 = ssub.s32 %s3568_s28, %s3717_s19  ;;  %s129_s23 = sadd.s32 1, %s3564_s27 }
  0x1c   : > { %p3721_p12 = pnand %p3184_p11, %p4196_p1  ;;  %p3727_p13 = scmp.eq.s32.totalorder %s126_s21, 0 }
  0x1d   : > { %p136_p0 = scmp.ne.s32.totalorder %s3564_s27, %s3560_s26  ;;  %s3345_s24 = scalar_lea.vmem %s399_s18, 32 }
  0x1e   : > { %s4225_s20 = scalar_select %p3721_p12, 1, 0 }
  0x1f   : > { %p4206_p3 = pneg %p3721_p12  ;;  %p3346_p5 = scmp.ne.s32.totalorder %s399_s18, %s3345_s24 }
  0x20   : > { %p3353_p10 = scmp.lt.s32.totalorder %s399_s18, %s399_s18  ;;  %p3354_p8 = scmp.lt.s32.totalorder %s3345_s24, %s3345_s24 }
  0x21   : > { %p3348_p7 = pnand %p3346_p5, %p4206_p3 }
  0x22   : > { %p3355_p1 = por %p3354_p8, %p3353_p10 }
  0x23   : > { %p3349_p11 = pneg %p3348_p7 }
  0x25   : > { %p3356_p2 = pnand %p3355_p1, %p3349_p11 }
  0x27   : > { %3359 = shalt.err (!%p3356_p2)
}
  0x28   : > { %s4227_s1 = sld [smem:[#allocation27_spill]]  ;;  %p137_p1 = scmp.eq.s32.totalorder %s3568_s28, 0 }
  0x29   : > { %s3747_s21 = scalar_select %p3727_p13, %s3564_s27, %s129_s23  }
  0x2a   : > { %p4229_p2 = scmp.eq.s32.totalorder %s3689_s29, 1  ;;  %p3208_p10 = scmp.lt.s32.totalorder %s3568_s28, 2 }
  0x2b   : > { %4228 = sst [smem:[#allocation24_spill]] %s3747_s21  ;;  %s434_s30 = sand.u32 1, %s3568_s28  }
  0x2c   : > { %p3755_p8 = por %p4229_p2, %p136_p0  ;;  %p138_p5 = por %p137_p1, %p136_p0 }
  0x2d   : > { %s4202_s17 = sand.u32 1, %s3564_s27   ;;  %s2880_s19 = sshll.u32 %s3568_s28, 4 }
  0x2e   : > { %3190 = dma.hbm_to_vmem [thread:$0]  (!%p3721_p12), %s4227_s1, 32, %s399_s18, [#allocation7]  }
  0x2f   : > { %s4230_s24 = scalar_select %p3755_p8, 1, 0 }
  0x30   : > { %s3769_s18 = scalar_lea.hbm %s4186_s4, %s2880_s19  ;;  %s437_s22 = scalar_lea.vmem [#allocation9], %s4202_s17 }
  0x31   : > { %4231 = sst [smem:[#allocation25_spill]] %s4230_s24  ;;  %s444_s23 = sshll.u32 %s437_s22, 4  ;;  %s445_s23 = int_to_ptr.vmem [resolvable:$true] %s444_s23 }
  0x32   : > { %p3773_p13 = pnand %p3208_p10, %p138_p5  ;;  %s3780_s13 = scalar_lea.hbm %s4189_s7, %s2880_s19 }
  0x33   : > { %s3782_s25 = scalar_lea.sflag [#allocation10], %s434_s30  ;;  %s3360_s15 = scalar_lea.hbm %s3769_s18, 16 }
  0x34   : > { %p3361_p0 = scmp.ne.s32.totalorder %s3769_s18, %s3360_s15  ;;  %p3362_p7 = pneg %p3773_p13 }
  0x35   : > { %s3365_s12 = scalar_lea.hbm %s4186_s4, 32  ;;  %p3366_p2 = scmp.lt.s32.totalorder %s3769_s18, %s4186_s4 }
  0x36   : > { %p3363_p11 = pnand %p3362_p7, %p3361_p0  ;;  %p3367_p10 = scmp.lt.s32.totalorder %s3365_s12, %s3360_s15 }
  0x38   : > { %p3364_p1 = pneg %p3363_p11  ;;  %p3368_p5 = por %p3367_p10, %p3366_p2 }
  0x3a   : > { %p3369_p3 = pnand %p3368_p5, %p3364_p1 }
  0x3c   : > { %3372 = shalt.err (!%p3369_p3)
}
  0x3d   : > { %s3373_s28 = scalar_lea.vmem %s445_s23, 16  ;;  %s3571_s19 = smov [#allocation9]  }
  0x3e   : > { %p3374_p6 = scmp.ne.s32.totalorder %s445_s23, %s3373_s28  ;;  %s3378_s21 = sshll.u32 %s3571_s19, 4  ;;  %s3379_s21 = int_to_ptr.vmem [resolvable:$false] %s3378_s21 }
  0x3f   : > { %s3380_s30 = scalar_lea.vmem %s3379_s21, 32  ;;  %p3381_p11 = scmp.lt.s32.totalorder %s445_s23, %s3379_s21 }
  0x40   : > { %p3376_p8 = pnand %p3374_p6, %p3362_p7  ;;  %p3382_p4 = scmp.lt.s32.totalorder %s3380_s30, %s3373_s28 }
  0x42   : > { %p3377_p0 = pneg %p3376_p8  ;;  %p3383_p9 = por %p3382_p4, %p3381_p11 }
  0x44   : > { %p3384_p12 = pnand %p3383_p9, %p3377_p0 }
  0x46   : > { %3387 = shalt.err (!%p3384_p12)
}
  0x47   : > { %3197 = dma.hbm_to_vmem [thread:$0]  (!%p3773_p13), %s3769_s18, 16, %s445_s23, %s3782_s25  }
  0x48   : > { %s3572_s11 = smov [#allocation3]   ;;  %p4233_p3 = scmp.ne.s32.totalorder %s4225_s20, 0 }
  0x49   : > { %s384_s12 = sshll.u32 %s3572_s11, 4  ;;  %s385_s12 = int_to_ptr.vmem [resolvable:$true] %s384_s12 }
  0x4a   : > { %s3399_s24 = scalar_lea.vmem %s385_s12, 256  ;;  %p4234_p8 = pneg %p4233_p3 }
  0x4b   : > { %p3400_p6 = scmp.ne.s32.totalorder %s385_s12, %s3399_s24  ;;  %p3407_p10 = scmp.lt.s32.totalorder %s385_s12, %s385_s12 }
  0x4c   : > { %p3408_p5 = scmp.lt.s32.totalorder %s3399_s24, %s3399_s24 }
  0x4d   : > { %p3402_p1 = pnand %p3400_p6, %p4234_p8 }
  0x4e   : > { %p3409_p4 = por %p3408_p5, %p3407_p10 }
  0x4f   : > { %p3403_p2 = pneg %p3402_p1 }
  0x51   : > { %p3410_p9 = pnand %p3409_p4, %p3403_p2 }
  0x53   : > { %3413 = shalt.err (!%p3410_p9)
}
  0x54   : > { %s3573_s17 = smov 128   ;;  %s3574_s15 = smov 8  }
  0x55   : > { %s4235_s0 = sld [smem:[#allocation26_spill]]  ;;  %s3575_s22 = smov [#allocation8]  }
  0x56   : > { %s409_s28 = sshll.u32 %s3575_s22, 4  ;;  %s4236_s19 = sand.u32 1, %s3564_s27   ;;  %s410_s28 = int_to_ptr.vmem [resolvable:$true] %s409_s28 }
  0x57   : > { %s470_s21 = scalar_lea.vmem [#allocation11], %s4236_s19  ;;  %s3425_s11 = scalar_lea.vmem %s410_s28, 32 }
  0x58   : > { %s477_s30 = sshll.u32 %s470_s21, 4  ;;  %p3426_p12 = scmp.ne.s32.totalorder %s410_s28, %s3425_s11  ;;  %s3815_s30 = int_to_ptr.vmem [resolvable:$true] %s477_s30 }
  0x59   : > { %p4237_p0 = pmov %p4234_p8  ;;  %p3433_p8 = scmp.lt.s32.totalorder %s410_s28, %s410_s28 }
  0x5a   : > { %p3434_p1 = scmp.lt.s32.totalorder %s3425_s11, %s3425_s11 }
  0x5b   : > { %3187 = dma.hbm_to_vmem [thread:$0]  (!%p4233_p3), %s4235_s0, 256, %s385_s12, [#allocation4], %s3573_s17, %s3573_s17, %s3574_s15  }
  0x5c   : > { %p3428_p11 = pnand %p3426_p12, %p4237_p0  ;;  %p3435_p2 = por %p3434_p1, %p3433_p8 }
  0x5e   : > { %p3429_p6 = pneg %p3428_p11 }
  0x60   : > { %p3436_p10 = pnand %p3435_p2, %p3429_p6 }
  0x62   : > { %3439 = shalt.err (!%p3436_p10)
}
  0x63   : > { %s4238_s2 = sld [smem:[#allocation28_spill]]  ;;  %s3440_s17 = scalar_lea.hbm %s3780_s13, 16 }
  0x64   : > { %p3441_p5 = scmp.ne.s32.totalorder %s3780_s13, %s3440_s17  ;;  %s3445_s23 = scalar_lea.hbm %s4189_s7, 32 }
  0x65   : > { %p3446_p12 = scmp.lt.s32.totalorder %s3780_s13, %s4189_s7  ;;  %p3447_p0 = scmp.lt.s32.totalorder %s3445_s23, %s3440_s17 }
  0x66   : > { %p3443_p4 = pnand %p3441_p5, %p3362_p7 }
  0x67   : > { %p3448_p11 = por %p3447_p0, %p3446_p12 }
  0x68   : > { %p3444_p9 = pneg %p3443_p4 }
  0x69   : > { %3193 = dma.hbm_to_vmem [thread:$0]  (!%p4233_p3), %s4238_s2, 32, %s410_s28, [#allocation7]  }
  0x6a   : > { %p3449_p6 = pnand %p3448_p11, %p3444_p9 }
  0x6c   : > { %3452 = shalt.err (!%p3449_p6)
}
  0x6d   : > { %s3453_s28 = scalar_lea.vmem %s3815_s30, 16  ;;  %s3576_s19 = smov [#allocation11]  }
  0x6e   : > { %p3454_p3 = scmp.ne.s32.totalorder %s3815_s30, %s3453_s28  ;;  %s3458_s21 = sshll.u32 %s3576_s19, 4  ;;  %s3459_s21 = int_to_ptr.vmem [resolvable:$false] %s3458_s21 }
  0x6f   : > { %s3460_s11 = scalar_lea.vmem %s3459_s21, 32  ;;  %p3461_p2 = scmp.lt.s32.totalorder %s3815_s30, %s3459_s21 }
  0x70   : > { %p3456_p8 = pnand %p3454_p3, %p3362_p7  ;;  %p3462_p10 = scmp.lt.s32.totalorder %s3460_s11, %s3453_s28 }
  0x72   : > { %p3457_p1 = pneg %p3456_p8  ;;  %p3463_p5 = por %p3462_p10, %p3461_p2 }
  0x74   : > { %p3464_p4 = pnand %p3463_p5, %p3457_p1 }
  0x76   : > { %3467 = shalt.err (!%p3464_p4)
}
  0x77   : > { %3200 = dma.hbm_to_vmem [thread:$0]  (!%p3773_p13), %s3780_s13, 16, %s3815_s30, %s3782_s25  }
  0x78   : > { %p4239_p9 = scmp.ne.s32.totalorder %s4223_s16, 0 }
  0x79   : > { %p4240_p7 = scmp.eq.s32.totalorder (!%p4239_p9), %s3689_s29, 0 }
  0x7a   : > { %501 = sbr.rel (%p4239_p9) target bundleno = 3362 (0xd22), region = 68 }
  0x7f   : > { %3535 = dma.done.wait (%p4240_p7), [#allocation4], 256   ;;  %p4241_p12 = pmov %p4240_p7 }
  0x80   : > { %p4242_p0 = pmov %p4240_p7 }
  0x81   : > { %3537 = vsyncadd (%p4241_p12), [#allocation4], 4294967040 }
  0x82   : > { %3539 = dma.done.wait (%p4242_p0), [#allocation7], 64   ;;  %p4243_p11 = pmov %p4242_p0 }
  0x83   : > { %s515_s1 = sand.u32 1, %s3689_s29   ;;  %s3860_s13 = sand.u32 1, %s3560_s26  }
  0x84   : > { %3541 = vsyncadd (%p4243_p11), [#allocation7], 4294967232  ;;  %s516_s16 = scalar_lea.sflag [#allocation10], %s515_s1  ;;  %p4244_p13 = scmp.ne.s32.totalorder %s4220_s14, 0 }
  0x86   : > { %3543 = dma.done.wait (%p4244_p13), %s516_s16, 32  }
  0x87   : > { %3545 = vsyncadd (%p4244_p13), %s516_s16, 4294967264  ;;  %s2886_s30 = sshll.u32 %s3860_s13, 2  ;;  %p596_p6 = scmp.lt.s32.totalorder %s3689_s29, 1 }
  0x88   : > { %s526_s2 = scalar_lea.vmem [#allocation11], %s3860_s13  ;;  %s3896_s22 = scalar_lea.vmem [#allocation12], %s2886_s30 }
  0x89   : > { %s597_s12 = scalar_select %p596_p6, %s3689_s29, 1 }
  0x8a   : > { %p4245_p3 = scmp.ne.s32.totalorder %s3689_s29, 0 }
  0x8b   : > { %s2950_s24 = sshll.u32 %s597_s12, 5  ;;  %s2953_s17 = sshll.u32 %s597_s12, 6 }
  0x8c   : > { %s3873_s23 = scalar_lea.vmem %s4185_s3, %s2950_s24  ;;  %s3878_s28 = scalar_lea.vmem %s4187_s5, %s2950_s24 }
  0x8d   : > { %s3883_s21 = scalar_lea.vmem %s4188_s6, %s2950_s24  ;;  %s3888_s16 = scalar_lea.vmem %s4190_s8, %s2953_s17 }
  0x8e   : > { %s2895_s25 = sshll.u32 %s597_s12, 3  ;;  %623 = sbr.rel (%p4245_p3) target bundleno = 479 (0x1df), region = 92 }
  0x8f   : > { %s3893_s18 = scalar_lea.vmem %s4191_s9, %s2895_s25 }
  0x93   : > { %v624_v0 = vld [vmem:[#allocation3] sm:$0xff]  ;;  %vm628_vm0 = vcmask 261120   ;;  %v625_v1 = vld [vmem:[#allocation3 + $0x8] sm:$0xff]  ;;  %v2897_v31 = vld [vmem:[#allocation8] ss:$0 sm:$0xff] }
  0x94   : > { %v629_v2 = vsel %vm628_vm0, %v624_v0, 0.0  ;;  %v632_v3 = vsel %vm628_vm0, %v625_v1, 0.0  ;;  %v2898_v33 = vld [vmem:[#allocation8 + $0x1] ss:$0 sm:$0xff] }
  0x95   : > { %630 = vadd.xlane.f32.xlu0 %v629_v2 }
  0x99   : > { %633 = vadd.xlane.f32.xlu0 %v632_v3 }
 0x11e   : > { %v631_v4 = vpop.xlane.xlu0 %630 }
 0x11f   : > { %v636_v5 = vmul.f32 0.03125, %v631_v4 }
 0x121   : > { %v638_v6 = vsub.f32 %v624_v0, %v636_v5 }
 0x122   : > { %v634_v7 = vpop.xlane.xlu0 %633 }
 0x123   : > { %v637_v8 = vmul.f32 0.03125, %v634_v7  ;;  %v640_v9 = vmul.f32 %v638_v6, %v638_v6 }
 0x125   : > { %v639_v10 = vsub.f32 %v625_v1, %v637_v8  ;;  %v642_v11 = vsel %vm628_vm0, %v640_v9, 0.0 }
 0x126   : > { %643 = vadd.xlane.f32.xlu1 %v642_v11 }
 0x127   : > { %v641_v12 = vmul.f32 %v639_v10, %v639_v10 }
 0x129   : > { %v645_v13 = vsel %vm628_vm0, %v641_v12, 0.0 }
 0x12a   : > { %646 = vadd.xlane.f32.xlu1 %v645_v13 }
 0x1af   : > { %v644_v14 = vpop.xlane.xlu1 %643 }
 0x1b0   : > { %v648_v15 = vmul.f32 0.03125, %v644_v14 }
 0x1b2   : > { %v650_v16 = vadd.f32 1e-12, %v648_v15 }
 0x1b3   : > { %v647_v17 = vpop.xlane.xlu1 %646 }
 0x1b4   : > { %3272 = vrsqrt.f32 %v650_v16  ;;  %v649_v18 = vmul.f32 0.03125, %v647_v17  ;;  %vm654_vm1 = vcmp.eq.f32.partialorder %v650_v16, inf  ;;  %v657_v22 = vand.u32 2147483648, %v650_v16 }
 0x1b5   : > { %vm656_vm2 = vcmp.eq.f32.partialorder %v650_v16, 0.0 }
 0x1b6   : > { %v651_v19 = vadd.f32 1e-12, %v649_v18 }
 0x1b8   : > { %3274 = vrsqrt.f32 %v651_v19  ;;  %vm661_vm3 = vcmp.eq.f32.partialorder %v651_v19, inf  ;;  %v664_v27 = vand.u32 2147483648, %v651_v19  ;;  %vm663_vm4 = vcmp.eq.f32.partialorder %v651_v19, 0.0 }
 0x1c1   : > { %v3273_v20 = vpop.eup %3272 }
 0x1c2   : > { %v653_v21 = vmul.f32 %v3273_v20, %v650_v16 }
 0x1c4   : > { %v655_v23 = vsel %vm654_vm1, %v650_v16, %v653_v21 }
 0x1c5   : > { %v658_v24 = vsel %vm656_vm2, %v657_v22, %v655_v23  ;;  %v3275_v25 = vpop.eup %3274 }
 0x1c6   : > { %3276 = vrcp.f32 %v658_v24  ;;  %v660_v26 = vmul.f32 %v3275_v25, %v651_v19 }
 0x1c8   : > { %v662_v28 = vsel %vm661_vm3, %v651_v19, %v660_v26 }
 0x1c9   : > { %v665_v29 = vsel %vm663_vm4, %v664_v27, %v662_v28 }
 0x1ca   : > { %3278 = vrcp.f32 %v665_v29 }
 0x1d3   : > { %v3277_v30 = vpop.eup %3276 }
 0x1d4   : > { %v667_v32 = vmul.f32 %v3277_v30, %v638_v6 }
 0x1d6   : > { %v674_v34 = vmul.f32 %v2897_v31, %v667_v32 }
 0x1d7   : > { %v3279_v35 = vpop.eup %3278 }
 0x1d8   : > { %v680_v36 = vadd.f32 %v2898_v33, %v674_v34  ;;  %v669_v37 = vmul.f32 %v3279_v35, %v639_v10 }
 0x1da   : > { %682 = vst.msk [vmem:[#allocation2] sm:$0xff] %vm628_vm0, %v680_v36  ;;  %v675_v38 = vmul.f32 %v2897_v31, %v669_v37 }
 0x1dc   : > { %v681_v39 = vadd.f32 %v2898_v33, %v675_v38 }
 0x1de   : > { %683 = vst.msk [vmem:[#allocation2 + $0x8] sm:$0xff] %vm628_vm0, %v681_v39 }
 0x1df PF: > { %v689_v40 = vld [vmem:[%s3873_s23 + $0x18] sm:$0xff]  ;;  %v688_v41 = vld [vmem:[%s3873_s23 + $0x10] sm:$0xff]  ;;  %vm697_vm5 = vcmask 261120   ;;  %v687_v43 = vld [vmem:[%s3873_s23 + $0x8] sm:$0xff]  ;;  %v3577_v46 = vmov 0.0   ;;  %vm3578_vm6 = vmmov 0  }
 0x1e0   : > { %3019 = vmatprep.subr.mxu1 %v689_v40  ;;  %v686_v44 = vld [vmem:[%s3873_s23] sm:$0xff]  ;;  %3040 = vmatprep.subr.mxu0 %v3577_v46  ;;  %s4246_s0 = scalar_lea.vmem [#allocation9], %s3860_s13  ;;  %s3579_s25 = smov 120   ;;  %vm787_vm7 = vcmask 64512   ;;  %vm1457_vm8 = vcmask 130048   ;;  %vm1459_vm9 = vcmask 195584  }
 0x1e1   : > { %v3908_v42 = vld [vmem:[#allocation2] sm:$0xff]  ;;  %3020 = vmatpush3.msra.mxu1 %v689_v40  ;;  %3042 = vmatprep.mubr.msk.f32.mxu0 %vm3578_vm6, %v3577_v46  ;;  %s3580_s30 = smov 96   ;;  %s3581_s12 = smov 80   ;;  %vm2410_vm14 = vcmask 523264   ;;  %vm2565_vm3 = vcmask 785408  }
 0x1e2   : > { %3027 = vmatprep.mubr.msk.f32.mxu1 %vm697_vm5, %v3908_v42  ;;  %3021 = vmatprep.subr.mxu1 %v688_v41  ;;  %v2899_v48 = vld [vmem:[%s4246_s0] ss:$0 sm:$0xff]  ;;  %s3582_s24 = smov 88   ;;  %s3583_s17 = smov 72   ;;  %v2915_v19 = vld [vmem:[#allocation6 + $0x1] ss:$0 sm:$0xff] }
 0x1e3   : > { %3022 = vmatpush3.msra.mxu1 %v688_v41  ;;  %s3584_s23 = smov 112   ;;  %s3585_s20 = smov 104   ;;  %v2902_v3 = vld [vmem:[#allocation6] ss:$0 sm:$0xff] }
 0x1e4   : > { %3023 = vmatprep.subr.mxu1 %v687_v43  ;;  %s3586_s14 = smov 56   ;;  %s3587_s19 = smov 64  }
 0x1e5   : > { %3024 = vmatpush3.msra.mxu1 %v687_v43  ;;  %v3914_v45 = vld [vmem:[#allocation2 + $0x8] sm:$0xff]  ;;  %s3588_s11 = smov 40   ;;  %s3589_s1 = smov 48  }
 0x1e6   : > { %3025 = vmatprep.subr.mxu1 %v686_v44  ;;  %s3590_s15 = smov 8   ;;  %s3591_s0 = smov 16  }
 0x1e7   : > { %3026 = vmatpush3.msra.mxu1 %v686_v44  ;;  %p2941_p8 = scmp.ne.s32.totalorder %s3689_s29, 1 }
 0x1e8   : > { %3028 = vmatmul.mubr.msk.f32.vlgmr.msra.gmra.mxu1 %vm697_vm5, %v3914_v45  ;;  %3030 = vmatprep.subr.mxu1 %v3577_v46 }
 0x1e9   : > { %3032 = vmatprep.mubr.msk.f32.mxu1 %vm3578_vm6, %v3577_v46 }
 0x2a8   : > { %v3029_v47 = vpop.f32.mrf.mxu1 }
 0x2a9   : > { %v3935_v51 = vadd.f32 %v3029_v47, %v2899_v48 }
 0x2aa   : > { %v770_v49 = vpop.f32.mrf.mxu1 }
 0x2ab   : > { %v3926_v50 = vadd.f32 %v2899_v48, %v770_v49 }
 0x2ad   : > { %949 = vrot.lane.b32.xlu1 %v3926_v50, %s3579_s25  ;;  %785 = vrot.lane.b32.xlu0 %v3926_v50, %s3580_s30 }
 0x2b1   : > { %1116 = vrot.lane.b32.xlu1 %v3926_v50, %s3581_s12  ;;  %951 = vrot.lane.b32.xlu0 %v3926_v50, %s3582_s24 }
 0x2b5   : > { %1281 = vrot.lane.b32.xlu1 %v3926_v50, %s3583_s17  ;;  %1114 = vrot.lane.b32.xlu0 %v3926_v50, %s3584_s23 }
 0x2b9   : > { %1467 = vrot.lane.b32.xlu1 %v3935_v51, %s3580_s30  ;;  %1279 = vrot.lane.b32.xlu0 %v3926_v50, %s3585_s20 }
 0x2bd   : > { %1630 = vrot.lane.b32.xlu1 %v3935_v51, %s3579_s25  ;;  %1632 = vrot.lane.b32.xlu0 %v3935_v51, %s3582_s24  ;;  %s3592_s25 = smov 24  }
 0x2c1   : > { %1795 = vrot.lane.b32.xlu1 %v3935_v51, %s3584_s23  ;;  %1797 = vrot.lane.b32.xlu0 %v3935_v51, %s3581_s12 }
 0x2c5   : > { %1960 = vrot.lane.b32.xlu1 %v3935_v51, %s3585_s20  ;;  %1962 = vrot.lane.b32.xlu0 %v3935_v51, %s3583_s17 }
 0x2c9   : > { %1038 = vrot.lane.b32.xlu1 %v3926_v50, %s3586_s14  ;;  %873 = vrot.lane.b32.xlu0 %v3926_v50, %s3587_s19 }
 0x31f   : > { %v950_v52 = vpop.permute.xlu1 %949  ;;  %v786_v53 = vpop.permute.xlu0 %785 }
 0x320   : > { %3031 = vmatpush3.xpose.msk.msra.mxu1 %vm787_vm7, %v786_v53 }
 0x321   : > { %3035 = vmatprep.subr.mxu1 %v3577_v46 }
 0x323   : > { %v1117_v54 = vpop.permute.xlu1 %1116  ;;  %3033 = vmatmul.mubr.msk.f32.vlgmr.msra.gmra.mxu1 %vm787_vm7, %v3926_v50  ;;  %v952_v55 = vpop.permute.xlu0 %951 }
 0x324   : > { %3041 = vmatpush3.xpose.msk.msra.mxu0 %vm787_vm7, %v952_v55  ;;  %3037 = vmatprep.mubr.msk.f32.mxu1 %vm3578_vm6, %v3577_v46 }
 0x325   : > { %3050 = vmatprep.subr.mxu0 %v3577_v46 }
 0x327   : > { %v1282_v56 = vpop.permute.xlu1 %1281  ;;  %3043 = vmatmul.mubr.msk.f32.vlgmr.msra.gmra.mxu0 %vm787_vm7, %v950_v52  ;;  %v1115_v57 = vpop.permute.xlu0 %1114 }
 0x328   : > { %3051 = vmatpush3.xpose.msk.msra.mxu0 %vm787_vm7, %v1117_v54  ;;  %3052 = vmatprep.mubr.msk.f32.mxu0 %vm3578_vm6, %v3577_v46 }
 0x329   : > { %3060 = vmatprep.subr.mxu0 %v3577_v46 }
 0x32b   : > { %3053 = vmatmul.mubr.msk.f32.vlgmr.msra.gmra.mxu0 %vm787_vm7, %v1115_v57  ;;  %v1280_v58 = vpop.permute.xlu0 %1279  ;;  %v1468_v59 = vpop.permute.xlu1 %1467 }
 0x32c   : > { %3061 = vmatpush3.xpose.msk.msra.mxu0 %vm787_vm7, %v1282_v56  ;;  %3062 = vmatprep.mubr.msk.f32.mxu0 %vm3578_vm6, %v3577_v46 }
 0x32d   : > { %3070 = vmatprep.subr.mxu0 %v3577_v46 }
 0x32f   : > { %3063 = vmatmul.mubr.msk.f32.vlgmr.msra.gmra.mxu0 %vm787_vm7, %v1280_v58  ;;  %v1633_v60 = vpop.permute.xlu0 %1632  ;;  %v1631_v61 = vpop.permute.xlu1 %1630 }
 0x330   : > { %3071 = vmatpush3.xpose.msk.msra.mxu0 %vm787_vm7, %v1468_v59  ;;  %3072 = vmatprep.mubr.msk.f32.mxu0 %vm3578_vm6, %v3577_v46 }
 0x331   : > { %3080 = vmatprep.subr.mxu0 %v3577_v46 }
 0x333   : > { %3073 = vmatmul.mubr.msk.f32.vlgmr.msra.gmra.mxu0 %vm787_vm7, %v3935_v51  ;;  %v1798_v62 = vpop.permute.xlu0 %1797  ;;  %v1796_v0 = vpop.permute.xlu1 %1795 }
 0x334   : > { %3081 = vmatpush3.xpose.msk.msra.mxu0 %vm787_vm7, %v1633_v60  ;;  %3082 = vmatprep.mubr.msk.f32.mxu0 %vm3578_vm6, %v3577_v46 }
 0x335   : > { %3090 = vmatprep.subr.mxu0 %v3577_v46 }
 0x337   : > { %3083 = vmatmul.mubr.msk.f32.vlgmr.msra.gmra.mxu0 %vm787_vm7, %v1631_v61  ;;  %v1963_v63 = vpop.permute.xlu0 %1962  ;;  %v1961_v2 = vpop.permute.xlu1 %1960 }
 0x338   : > { %3091 = vmatpush3.xpose.msk.msra.mxu0 %vm787_vm7, %v1798_v62  ;;  %3092 = vmatprep.mubr.msk.f32.mxu0 %vm3578_vm6, %v3577_v46 }
 0x339   : > { %3100 = vmatprep.subr.mxu0 %v3577_v46 }
 0x33b   : > { %3093 = vmatmul.mubr.msk.f32.vlgmr.msra.gmra.mxu0 %vm787_vm7, %v1796_v0  ;;  %v874_v1 = vpop.permute.xlu0 %873  ;;  %v4002_v37 = vpop.permute.xlu1 %1038 }
 0x33c   : > { %3036 = vmatpush3.msra.mxu1 %v874_v1  ;;  %3101 = vmatpush3.xpose.msk.msra.mxu0 %vm787_vm7, %v1963_v63 }
 0x33d   : > { %3102 = vmatprep.mubr.msk.f32.mxu0 %vm3578_vm6, %v3577_v46  ;;  %3045 = vmatprep.subr.mxu1 %v3577_v46 }
 0x33f   : > { %3103 = vmatmul.mubr.msk.f32.vlgmr.msra.gmra.mxu0 %vm787_vm7, %v1961_v2 }
 0x3e3   : > { %v858_v4 = vpop.f32.mrf.mxu1 }
 0x3e4   : > { %v859_v5 = vadd.f32 %v2902_v3, %v858_v4 }
 0x3e5   : > { %v3034_v6 = vpop.f32.mrf.mxu1 }
 0x3e6   : > { %v862_v7 = vsel %vm787_vm7, %v859_v5, -inf }
 0x3e7   : > { %863 = vmax.xlane.f32.xlu0 %v862_v7  ;;  %v1023_v8 = vpop.f32.mrf.mxu0 }
 0x3e8   : > { %v1024_v9 = vadd.f32 %v2902_v3, %v1023_v8 }
 0x3e9   : > { %v3044_v10 = vpop.f32.mrf.mxu0 }
 0x3ea   : > { %v1027_v11 = vsel %vm787_vm7, %v1024_v9, -inf }
 0x3eb   : > { %1028 = vmax.xlane.f32.xlu1 %v1027_v11  ;;  %v1188_v12 = vpop.f32.mrf.mxu0 }
 0x3ec   : > { %v1189_v13 = vadd.f32 %v2902_v3, %v1188_v12 }
 0x3ed   : > { %v3054_v14 = vpop.f32.mrf.mxu0 }
 0x3ee   : > { %v1192_v15 = vsel %vm787_vm7, %v1189_v13, -inf }
 0x3ef   : > { %1193 = vmax.xlane.f32.xlu0 %v1192_v15  ;;  %v1353_v16 = vpop.f32.mrf.mxu0 }
 0x3f0   : > { %v1354_v17 = vadd.f32 %v2902_v3, %v1353_v16 }
 0x3f1   : > { %v3064_v18 = vpop.f32.mrf.mxu0 }
 0x3f2   : > { %v1357_v20 = vsel %vm787_vm7, %v1354_v17, -inf }
 0x3f3   : > { %1358 = vmax.xlane.f32.xlu0 %v1357_v20  ;;  %v1539_v21 = vpop.f32.mrf.mxu0 }
 0x3f4   : > { %v1540_v22 = vadd.f32 %v2915_v19, %v1539_v21 }
 0x3f5   : > { %v3074_v23 = vpop.f32.mrf.mxu0 }
 0x3f6   : > { %v1543_v24 = vsel %vm787_vm7, %v1540_v22, -inf }
 0x3f7   : > { %1544 = vmax.xlane.f32.xlu1 %v1543_v24  ;;  %v1704_v25 = vpop.f32.mrf.mxu0 }
 0x3f8   : > { %v1705_v26 = vadd.f32 %v2915_v19, %v1704_v25 }
 0x3f9   : > { %v3084_v27 = vpop.f32.mrf.mxu0 }
 0x3fa   : > { %v1708_v28 = vsel %vm787_vm7, %v1705_v26, -inf }
 0x3fb   : > { %1709 = vmax.xlane.f32.xlu0 %v1708_v28  ;;  %v1869_v29 = vpop.f32.mrf.mxu0 }
 0x3fc   : > { %v1870_v30 = vadd.f32 %v2915_v19, %v1869_v29 }
 0x3fd   : > { %v3094_v31 = vpop.f32.mrf.mxu0 }
 0x3fe   : > { %v1873_v32 = vsel %vm787_vm7, %v1870_v30, -inf }
 0x3ff   : > { %1874 = vmax.xlane.f32.xlu1 %v1873_v32  ;;  %v2034_v33 = vpop.f32.mrf.mxu0 }
 0x400   : > { %v2035_v34 = vadd.f32 %v2915_v19, %v2034_v33 }
 0x401   : > { %v3104_v35 = vpop.f32.mrf.mxu0 }
 0x402   : > { %v2038_v36 = vsel %vm787_vm7, %v2035_v34, -inf }
 0x403   : > { %2039 = vmax.xlane.f32.xlu0 %v2038_v36 }
 0x410   : > { %1368 = vrot.lane.b32.xlu1 %v3926_v50, %s3588_s11 }
 0x419   : > { %1203 = vrot.lane.b32.xlu0 %v3926_v50, %s3589_s1 }
 0x470   : > { %v864_v38 = vpop.xlane.xlu0 %863 }
 0x471   : > { %v865_v39 = vsub.f32 %v859_v5, %v864_v38 }
 0x473   : > { %v866_v40 = vmul.f32 1.442695, %v865_v39 }
 0x474   : > { %v1029_v41 = vpop.xlane.xlu1 %1028 }
 0x475   : > { %3280 = vpow2.f32 %v866_v40  ;;  %v1030_v43 = vsub.f32 %v1024_v9, %v1029_v41 }
 0x477   : > { %v1031_v44 = vmul.f32 1.442695, %v1030_v43 }
 0x478   : > { %v1194_v47 = vpop.xlane.xlu0 %1193 }
 0x479   : > { %3282 = vpow2.f32 %v1031_v44  ;;  %v1195_v48 = vsub.f32 %v1189_v13, %v1194_v47 }
 0x47b   : > { %v1196_v49 = vmul.f32 1.442695, %v1195_v48 }
 0x47c   : > { %v1359_v52 = vpop.xlane.xlu0 %1358 }
 0x47d   : > { %3284 = vpow2.f32 %v1196_v49  ;;  %v1360_v53 = vsub.f32 %v1354_v17, %v1359_v52 }
 0x47f   : > { %v1361_v54 = vmul.f32 1.442695, %v1360_v53 }
 0x480   : > { %v1545_v62 = vpop.xlane.xlu1 %1544 }
 0x481   : > { %3286 = vpow2.f32 %v1361_v54  ;;  %v1546_v63 = vsub.f32 %v1540_v22, %v1545_v62 }
 0x482   : > { %v3281_v55 = vpop.eup %3280 }
 0x483   : > { %v868_v50 = vsel %vm787_vm7, %v3281_v55, 0.0  ;;  %v1547_v3 = vmul.f32 1.442695, %v1546_v63 }
 0x484   : > { %869 = vadd.xlane.f32.xlu1 %v868_v50  ;;  %v1710_v0 = vpop.xlane.xlu0 %1709 }
 0x485   : > { %v1711_v2 = vsub.f32 %v1705_v26, %v1710_v0  ;;  %3288 = vpow2.f32 %v1547_v3 }
 0x486   : > { %v3283_v56 = vpop.eup %3282 }
 0x487   : > { %v1033_v57 = vsel %vm787_vm7, %v3283_v56, 0.0  ;;  %v1712_v6 = vmul.f32 1.442695, %v1711_v2 }
 0x488   : > { %1034 = vadd.xlane.f32.xlu0 %v1033_v57  ;;  %v1875_v1 = vpop.xlane.xlu1 %1874 }
 0x489   : > { %v1876_v4 = vsub.f32 %v1870_v30, %v1875_v1  ;;  %3290 = vpow2.f32 %v1712_v6 }
 0x48a   : > { %v3285_v58 = vpop.eup %3284 }
 0x48b   : > { %v1198_v59 = vsel %vm787_vm7, %v3285_v58, 0.0  ;;  %v1877_v7 = vmul.f32 1.442695, %v1876_v4 }
 0x48c   : > { %1199 = vadd.xlane.f32.xlu1 %v1198_v59  ;;  %v2040_v5 = vpop.xlane.xlu0 %2039  ;;  %v1369_v18 = vpop.permute.xlu1 %1368  ;;  %v2142_v59 = vld [vmem:[%s3878_s28 + $0x10] sm:$0xff] }
 0x48d   : > { %v2041_v8 = vsub.f32 %v2035_v34, %v2040_v5  ;;  %3292 = vpow2.f32 %v1877_v7 }
 0x48e   : > { %v4007_v60 = vpop.eup %3286 }
 0x48f   : > { %v1363_v61 = vsel %vm787_vm7, %v4007_v60, 0.0  ;;  %v2042_v9 = vmul.f32 1.442695, %v2041_v8 }
 0x490   : > { %1364 = vadd.xlane.f32.xlu0 %v1363_v61  ;;  %v1204_v19 = vpop.permute.xlu0 %1203  ;;  %v2140_v61 = vld [vmem:[%s3878_s28] sm:$0xff] }
 0x491   : > { %3294 = vpow2.f32 %v2042_v9 }
 0x492   : > { %v3289_v10 = vpop.eup %3288 }
 0x493   : > { %v1549_v12 = vsel %vm787_vm7, %v3289_v10, 0.0 }
 0x496   : > { %v4015_v11 = vpop.eup %3290 }
 0x497   : > { %v1714_v15 = vsel %vm787_vm7, %v4015_v11, 0.0 }
 0x49a   : > { %v4018_v13 = vpop.eup %3292 }
 0x49b   : > { %v1879_v14 = vsel %vm787_vm7, %v4018_v13, 0.0 }
 0x49d   : > { %1719 = vrot.lane.b32.xlu1 %v3935_v51, %s3586_s14  ;;  %s4247_s14 = sld [smem:[#allocation29_spill]] (!%p2941_p8) }
 0x49e   : > { %v4024_v16 = vpop.eup %3294 }
 0x49f   : > { %v2044_v17 = vsel %vm787_vm7, %v4024_v16, 0.0 }
 0x4a6   : > { %1554 = vrot.lane.b32.xlu0 %v3935_v51, %s3587_s19 }
 0x4c1   : > { %1550 = vadd.xlane.f32.xlu1 %v1549_v12 }
 0x4c5   : > { %1880 = vadd.xlane.f32.xlu1 %v1879_v14  ;;  %1715 = vadd.xlane.f32.xlu0 %v1714_v15 }
 0x4c9   : > { %2045 = vadd.xlane.f32.xlu1 %v2044_v17 }
 0x4da   : > { %2049 = vrot.lane.b32.xlu1 %v3935_v51, %s3588_s11 }
 0x4db   : > { %1884 = vrot.lane.b32.xlu0 %v3935_v51, %s3589_s1 }
 0x50d   : > { %v870_v20 = vpop.xlane.xlu1 %869 }
 0x50e   : > { %3296 = vrcp.f32 %v870_v20 }
 0x511   : > { %v1035_v21 = vpop.xlane.xlu0 %1034 }
 0x512   : > { %3298 = vrcp.f32 %v1035_v21 }
 0x515   : > { %v1200_v22 = vpop.xlane.xlu1 %1199 }
 0x516   : > { %3300 = vrcp.f32 %v1200_v22 }
 0x519   : > { %v1365_v23 = vpop.xlane.xlu0 %1364  ;;  %v1720_v32 = vpop.permute.xlu1 %1719 }
 0x51a   : > { %3302 = vrcp.f32 %v1365_v23 }
 0x51b   : > { %v3297_v24 = vpop.eup %3296 }
 0x51c   : > { %v872_v25 = vmul.f32 %v3297_v24, %v3281_v55 }
 0x51d   : > { %v1555_v31 = vpop.permute.xlu0 %1554 }
 0x51e   : > { %3038 = vmatmul.mubr.msk.f32.vlgmr.msra.gmra.mxu1 %vm787_vm7, %v872_v25 }
 0x51f   : > { %v3299_v26 = vpop.eup %3298  ;;  %3046 = vmatpush3.msra.mxu1 %v4002_v37  ;;  %3047 = vmatprep.mubr.msk.f32.mxu1 %vm3578_vm6, %v3577_v46 }
 0x520   : > { %3055 = vmatprep.subr.mxu1 %v3577_v46  ;;  %v1037_v51 = vmul.f32 %v3299_v26, %v3283_v56 }
 0x522   : > { %3048 = vmatmul.mubr.msk.f32.vlgmr.msra.gmra.mxu1 %vm787_vm7, %v1037_v51 }
 0x523   : > { %v3301_v27 = vpop.eup %3300  ;;  %3056 = vmatpush3.msra.mxu1 %v1204_v19  ;;  %3057 = vmatprep.mubr.msk.f32.mxu1 %vm3578_vm6, %v3577_v46 }
 0x524   : > { %3065 = vmatprep.subr.mxu1 %v3577_v46  ;;  %v1202_v28 = vmul.f32 %v3301_v27, %v3285_v58  ;;  %v2143_v58 = vld [vmem:[%s3878_s28 + $0x18] sm:$0xff] }
 0x525   : > { %3110 = vmatprep.subr.mxu0 %v2143_v58 }
 0x526   : > { %3058 = vmatmul.mubr.msk.f32.vlgmr.msra.gmra.mxu1 %vm787_vm7, %v1202_v28  ;;  %3111 = vmatpush3.msra.mxu0 %v2143_v58  ;;  %v2931_v58 = vld [vmem:[%s3893_s18 + $0x1] ss:$0 sm:$0xff] }
 0x527   : > { %v3303_v29 = vpop.eup %3302  ;;  %3066 = vmatpush3.msra.mxu1 %v1369_v18  ;;  %3067 = vmatprep.mubr.msk.f32.mxu1 %vm3578_vm6, %v3577_v46  ;;  %v2928_v18 = vld [vmem:[%s3893_s18] ss:$0 sm:$0xff] }
 0x528   : > { %3075 = vmatprep.subr.mxu1 %v3577_v46  ;;  %v1367_v30 = vmul.f32 %v3303_v29, %v4007_v60  ;;  %3112 = vmatprep.subr.mxu0 %v2142_v59  ;;  %v2141_v60 = vld [vmem:[%s3878_s28 + $0x8] sm:$0xff] }
 0x529   : > { %3113 = vmatpush3.msra.mxu0 %v2142_v59 }
 0x52a   : > { %3068 = vmatmul.mubr.msk.f32.vlgmr.msra.gmra.mxu1 %vm787_vm7, %v1367_v30  ;;  %3114 = vmatprep.subr.mxu0 %v2141_v60 }
 0x52b   : > { %3076 = vmatpush3.msra.mxu1 %v1555_v31  ;;  %3077 = vmatprep.mubr.msk.f32.mxu1 %vm3578_vm6, %v3577_v46 }
 0x52c   : > { %3085 = vmatprep.subr.mxu1 %v3577_v46  ;;  %3115 = vmatpush3.msra.mxu0 %v2141_v60  ;;  %v2932_v60 = vld [vmem:[%s3893_s18 + $0x2] ss:$0 sm:$0xff] }
 0x52d   : > { %3116 = vmatprep.subr.mxu0 %v2140_v61 }
 0x52e   : > { %3117 = vmatpush3.msra.mxu0 %v2140_v61 }
 0x54a   : > { %v1551_v33 = vpop.xlane.xlu1 %1550 }
 0x54b   : > { %3304 = vrcp.f32 %v1551_v33 }
 0x54e   : > { %v1881_v34 = vpop.xlane.xlu1 %1880  ;;  %v1716_v35 = vpop.xlane.xlu0 %1715 }
 0x54f   : > { %3306 = vrcp.f32 %v1716_v35  ;;  %v2289_v35 = vld [vmem:[%s3883_s21 + $0x10] sm:$0xff] }
 0x550   : > { %3308 = vrcp.f32 %v1881_v34  ;;  %v2290_v34 = vld [vmem:[%s3883_s21 + $0x18] sm:$0xff] }
 0x552   : > { %v2046_v36 = vpop.xlane.xlu1 %2045  ;;  %v1885_v43 = vpop.permute.xlu0 %1884 }
 0x553   : > { %3310 = vrcp.f32 %v2046_v36  ;;  %v2288_v36 = vld [vmem:[%s3883_s21 + $0x8] sm:$0xff] }
 0x556   : > { %v2050_v48 = vpop.permute.xlu1 %2049 }
 0x558   : > { %v3305_v37 = vpop.eup %3304 }
 0x559   : > { %v1553_v38 = vmul.f32 %v3305_v37, %v3289_v10  ;;  %v2287_v37 = vld [vmem:[%s3883_s21] sm:$0xff] }
 0x55b   : > { %3078 = vmatmul.mubr.msk.f32.vlgmr.msra.gmra.mxu1 %vm787_vm7, %v1553_v38 }
 0x55c   : > { %3086 = vmatpush3.msra.mxu1 %v1720_v32  ;;  %3087 = vmatprep.mubr.msk.f32.mxu1 %vm3578_vm6, %v3577_v46  ;;  %v3307_v39 = vpop.eup %3306 }
 0x55d   : > { %3095 = vmatprep.subr.mxu1 %v3577_v46  ;;  %v1718_v40 = vmul.f32 %v3307_v39, %v4015_v11  ;;  %v3309_v41 = vpop.eup %3308 }
 0x55e   : > { %v1883_v44 = vmul.f32 %v3309_v41, %v4018_v13 }
 0x55f   : > { %3088 = vmatmul.mubr.msk.f32.vlgmr.msra.gmra.mxu1 %vm787_vm7, %v1718_v40 }
 0x560   : > { %3096 = vmatpush3.msra.mxu1 %v1885_v43  ;;  %3097 = vmatprep.mubr.msk.f32.mxu1 %vm3578_vm6, %v3577_v46  ;;  %v3311_v47 = vpop.eup %3310 }
 0x561   : > { %3105 = vmatprep.subr.mxu1 %v3577_v46  ;;  %v2048_v49 = vmul.f32 %v3311_v47, %v4024_v16 }
 0x563   : > { %3098 = vmatmul.mubr.msk.f32.vlgmr.msra.gmra.mxu1 %vm787_vm7, %v1883_v44 }
 0x564   : > { %3106 = vmatpush3.msra.mxu1 %v2050_v48  ;;  %3107 = vmatprep.mubr.msk.f32.mxu1 %vm3578_vm6, %v3577_v46 }
 0x565   : > { %3121 = vmatprep.subr.mxu1 %v2290_v34 }
 0x567   : > { %3108 = vmatmul.mubr.msk.f32.vlgmr.msra.gmra.mxu1 %vm787_vm7, %v2048_v49 }
 0x568   : > { %3122 = vmatpush3.msra.mxu1 %v2290_v34 }
 0x569   : > { %3123 = vmatprep.subr.mxu1 %v2289_v35 }
 0x56a   : > { %3124 = vmatpush3.msra.mxu1 %v2289_v35 }
 0x56b   : > { %3125 = vmatprep.subr.mxu1 %v2288_v36 }
 0x56c   : > { %3126 = vmatpush3.msra.mxu1 %v2288_v36 }
 0x56d   : > { %3127 = vmatprep.subr.mxu1 %v2287_v37 }
 0x56e   : > { %3128 = vmatpush3.msra.mxu1 %v2287_v37 }
 0x5de   : > { %v945_v52 = vpop.f32.mrf.mxu1 }
 0x5e0   : > { %v3039_v53 = vpop.f32.mrf.mxu1 }
 0x5e2   : > { %v1110_v54 = vpop.f32.mrf.mxu1 }
 0x5e3   : > { %1445 = vrot.lane.b32.xlu0 %v1110_v54, %s3590_s15 }
 0x5e4   : > { %v3049_v55 = vpop.f32.mrf.mxu1 }
 0x5e6   : > { %v1275_v50 = vpop.f32.mrf.mxu1 }
 0x5e7   : > { %1449 = vrot.lane.b32.xlu1 %v1275_v50, %s3591_s0 }
 0x5e8   : > { %v3059_v56 = vpop.f32.mrf.mxu1 }
 0x5ea   : > { %v1440_v57 = vpop.f32.mrf.mxu1 }
 0x5eb   : > { %1453 = vrot.lane.b32.xlu1 %v1440_v57, %s3592_s25 }
 0x5ec   : > { %v3069_v46 = vpop.f32.mrf.mxu1 }
 0x61b   : > { %v1626_v62 = vpop.f32.mrf.mxu1 }
 0x61d   : > { %v3079_v63 = vpop.f32.mrf.mxu1 }
 0x61f   : > { %v1791_v0 = vpop.f32.mrf.mxu1 }
 0x620   : > { %2126 = vrot.lane.b32.xlu0 %v1791_v0, %s3590_s15 }
 0x621   : > { %v3089_v1 = vpop.f32.mrf.mxu1 }
 0x623   : > { %v1956_v2 = vpop.f32.mrf.mxu1 }
 0x624   : > { %2130 = vrot.lane.b32.xlu0 %v1956_v2, %s3591_s0 }
 0x625   : > { %v3099_v3 = vpop.f32.mrf.mxu1 }
 0x626   : > { %v2404_v3 = vld [vmem:[%s3888_s16 + $0x38] sm:$0xff] }
 0x627   : > { %v2121_v4 = vpop.f32.mrf.mxu1  ;;  %3132 = vmatprep.subr.mxu0 %v2404_v3 }
 0x628   : > { %2134 = vrot.lane.b32.xlu1 %v2121_v4, %s3592_s25  ;;  %v2403_v4 = vld [vmem:[%s3888_s16 + $0x30] sm:$0xff] }
 0x629   : > { %v3109_v5 = vpop.f32.mrf.mxu1 }
 0x62a   : > { %v2402_v5 = vld [vmem:[%s3888_s16 + $0x28] sm:$0xff] }
 0x655   : > { %v1446_v6 = vpop.permute.xlu0 %1445 }
 0x656   : > { %v1456_v8 = vsel %vm787_vm7, %v945_v52, %v1446_v6  ;;  %v2401_v6 = vld [vmem:[%s3888_s16 + $0x20] sm:$0xff] }
 0x659   : > { %v1450_v7 = vpop.permute.xlu1 %1449 }
 0x65a   : > { %v1458_v9 = vsel %vm1457_vm8, %v1456_v8, %v1450_v7  ;;  %v2400_v7 = vld [vmem:[%s3888_s16 + $0x18] sm:$0xff]  ;;  %v2399_v8 = vld [vmem:[%s3888_s16 + $0x10] sm:$0xff] }
 0x65d   : > { %v1454_v10 = vpop.permute.xlu1 %1453 }
 0x65e   : > { %v1460_v11 = vsel %vm1459_vm9, %v1458_v9, %v1454_v10  ;;  %v2398_v9 = vld [vmem:[%s3888_s16 + $0x8] sm:$0xff]  ;;  %v2397_v10 = vld [vmem:[%s3888_s16] sm:$0xff] }
 0x65f   : > { %3118 = vmatprep.mubr.msk.f32.mxu0 %vm697_vm5, %v1460_v11  ;;  %v2933_v11 = vld [vmem:[%s526_s2] ss:$0 sm:$0xff]  ;;  %s3593_s2 = smov 32  }
 0x692   : > { %v2127_v12 = vpop.permute.xlu0 %2126 }
 0x693   : > { %v2137_v14 = vsel %vm787_vm7, %v1626_v62, %v2127_v12 }
 0x696   : > { %v2131_v13 = vpop.permute.xlu0 %2130 }
 0x697   : > { %v2138_v15 = vsel %vm1457_vm8, %v2137_v14, %v2131_v13 }
 0x69a   : > { %v2135_v16 = vpop.permute.xlu1 %2134 }
 0x69b   : > { %v2139_v17 = vsel %vm1459_vm9, %v2138_v15, %v2135_v16 }
 0x69c   : > { %3119 = vmatmul.mubr.msk.f32.vlgmr.msra.gmra.mxu0 %vm697_vm5, %v2139_v17 }
 0x69d   : > { %3133 = vmatpush3.msra.mxu0 %v2404_v3 }
 0x69e   : > { %3134 = vmatprep.subr.mxu0 %v2403_v4 }
 0x69f   : > { %3135 = vmatpush3.msra.mxu0 %v2403_v4 }
 0x6a0   : > { %3136 = vmatprep.subr.mxu0 %v2402_v5 }
 0x6a1   : > { %3137 = vmatpush3.msra.mxu0 %v2402_v5 }
 0x6a2   : > { %3138 = vmatprep.subr.mxu0 %v2401_v6 }
 0x6a3   : > { %3139 = vmatpush3.msra.mxu0 %v2401_v6  ;;  %v2939_v6 = vld [vmem:[%s3893_s18 + $0x4] ss:$0 sm:$0xff] }
 0x6a4   : > { %3140 = vmatprep.subr.mxu0 %v2400_v7 }
 0x6a5   : > { %3141 = vmatpush3.msra.mxu0 %v2400_v7 }
 0x6a6   : > { %3142 = vmatprep.subr.mxu0 %v2399_v8 }
 0x6a7   : > { %3143 = vmatpush3.msra.mxu0 %v2399_v8  ;;  %v2940_v8 = vld [vmem:[%s3893_s18 + $0x5] ss:$0 sm:$0xff] }
 0x6a8   : > { %3144 = vmatprep.subr.mxu0 %v2398_v9 }
 0x6a9   : > { %3145 = vmatpush3.msra.mxu0 %v2398_v9 }
 0x6aa   : > { %3146 = vmatprep.subr.mxu0 %v2397_v10 }
 0x6ab   : > { %3147 = vmatpush3.msra.mxu0 %v2397_v10 }
 0x75c   : > { %v3120_v19 = vpop.f32.mrf.mxu0 }
 0x75d   : > { %v2227_v20 = vadd.f32 %v3120_v19, %v2928_v18 }
 0x75e   : > { %v2221_v21 = vpop.f32.mrf.mxu0 }
 0x75f   : > { %v2222_v22 = vadd.f32 %v2928_v18, %v2221_v21  ;;  %v2231_v23 = vadd.f32 %v2227_v20, %v3914_v45 }
 0x761   : > { %v2237_v24 = vsel %vm697_vm5, %v2231_v23, 0.0  ;;  %v2230_v25 = vadd.f32 %v2222_v22, %v3908_v42 }
 0x762   : > { %2238 = vadd.xlane.f32.xlu1 %v2237_v24 }
 0x763   : > { %v2234_v26 = vsel %vm697_vm5, %v2230_v25, 0.0 }
 0x764   : > { %2235 = vadd.xlane.f32.xlu0 %v2234_v26 }
 0x7eb   : > { %v2239_v51 = vpop.xlane.xlu1 %2238 }
 0x7ec   : > { %v2242_v27 = vmul.f32 0.03125, %v2239_v51 }
 0x7ed   : > { %v2236_v28 = vpop.xlane.xlu0 %2235 }
 0x7ee   : > { %v2241_v29 = vmul.f32 0.03125, %v2236_v28  ;;  %v2244_v30 = vsub.f32 %v2231_v23, %v2242_v27 }
 0x7f0   : > { %v2243_v31 = vsub.f32 %v2230_v25, %v2241_v29  ;;  %v2246_v33 = vmul.f32 %v2244_v30, %v2244_v30 }
 0x7f2   : > { %v2245_v32 = vmul.f32 %v2243_v31, %v2243_v31  ;;  %v2250_v42 = vsel %vm697_vm5, %v2246_v33, 0.0 }
 0x7f4   : > { %v2247_v45 = vsel %vm697_vm5, %v2245_v32, 0.0 }
 0x7f5   : > { %2248 = vadd.xlane.f32.xlu0 %v2247_v45  ;;  %v2936_v45 = vld [vmem:[%s3893_s18 + $0x3] ss:$0 sm:$0xff] }
 0x7f9   : > { %2251 = vadd.xlane.f32.xlu0 %v2250_v42 }
 0x87e   : > { %v2249_v38 = vpop.xlane.xlu0 %2248 }
 0x87f   : > { %v2253_v39 = vmul.f32 0.03125, %v2249_v38 }
 0x881   : > { %v2255_v40 = vadd.f32 1e-12, %v2253_v39 }
 0x882   : > { %v2252_v41 = vpop.xlane.xlu0 %2251 }
 0x883   : > { %3312 = vrsqrt.f32 %v2255_v40  ;;  %v2254_v43 = vmul.f32 0.03125, %v2252_v41  ;;  %vm2259_vm10 = vcmp.eq.f32.partialorder %v2255_v40, inf  ;;  %v2262_v49 = vand.u32 2147483648, %v2255_v40 }
 0x884   : > { %vm2261_vm11 = vcmp.eq.f32.partialorder %v2255_v40, 0.0 }
 0x885   : > { %v2256_v44 = vadd.f32 1e-12, %v2254_v43 }
 0x887   : > { %3314 = vrsqrt.f32 %v2256_v44  ;;  %vm2266_vm12 = vcmp.eq.f32.partialorder %v2256_v44, inf  ;;  %v2269_v50 = vand.u32 2147483648, %v2256_v44  ;;  %vm2268_vm13 = vcmp.eq.f32.partialorder %v2256_v44, 0.0 }
 0x890   : > { %v3313_v47 = vpop.eup %3312 }
 0x891   : > { %v2258_v48 = vmul.f32 %v3313_v47, %v2255_v40 }
 0x893   : > { %v2260_v52 = vsel %vm2259_vm10, %v2255_v40, %v2258_v48 }
 0x894   : > { %v2263_v53 = vsel %vm2261_vm11, %v2262_v49, %v2260_v52  ;;  %v3315_v54 = vpop.eup %3314 }
 0x895   : > { %3316 = vrcp.f32 %v2263_v53  ;;  %v2265_v55 = vmul.f32 %v3315_v54, %v2256_v44 }
 0x897   : > { %v2267_v56 = vsel %vm2266_vm12, %v2256_v44, %v2265_v55 }
 0x898   : > { %v2270_v57 = vsel %vm2268_vm13, %v2269_v50, %v2267_v56 }
 0x899   : > { %3318 = vrcp.f32 %v2270_v57 }
 0x8a2   : > { %v3317_v46 = vpop.eup %3316 }
 0x8a3   : > { %v2272_v59 = vmul.f32 %v3317_v46, %v2243_v31 }
 0x8a5   : > { %v2279_v61 = vmul.f32 %v2931_v58, %v2272_v59 }
 0x8a6   : > { %v3319_v62 = vpop.eup %3318 }
 0x8a7   : > { %v4086_v63 = vadd.f32 %v2932_v60, %v2279_v61  ;;  %v2274_v0 = vmul.f32 %v3319_v62, %v2244_v30 }
 0x8a9   : > { %3129 = vmatprep.mubr.msk.f32.mxu1 %vm697_vm5, %v4086_v63  ;;  %v2280_v1 = vmul.f32 %v2931_v58, %v2274_v0 }
 0x8ab   : > { %v2286_v2 = vadd.f32 %v2932_v60, %v2280_v1 }
 0x8ad   : > { %3130 = vmatmul.mubr.msk.f32.vlgmr.msra.gmra.mxu1 %vm697_vm5, %v2286_v2 }
 0x96d   : > { %v3131_v12 = vpop.f32.mrf.mxu1 }
 0x96e   : > { %v2376_v13 = vadd.f32 %v3131_v12, %v2933_v11 }
 0x96f   : > { %v2370_v14 = vpop.f32.mrf.mxu1 }
 0x970   : > { %v2382_v15 = vmul.f32 0.044715, %v2376_v13  ;;  %v2371_v16 = vadd.f32 %v2933_v11, %v2370_v14  ;;  %v2380_v30 = vmul.f32 0.5, %v2376_v13 }
 0x972   : > { %v2384_v17 = vmul.f32 %v2382_v15, %v2376_v13  ;;  %v2381_v18 = vmul.f32 0.044715, %v2371_v16  ;;  %v2379_v28 = vmul.f32 0.5, %v2371_v16 }
 0x974   : > { %v2386_v19 = vmul.f32 %v2384_v17, %v2376_v13  ;;  %v2383_v20 = vmul.f32 %v2381_v18, %v2371_v16 }
 0x976   : > { %v2388_v21 = vadd.f32 %v2386_v19, %v2376_v13  ;;  %v2385_v22 = vmul.f32 %v2383_v20, %v2371_v16 }
 0x978   : > { %v2390_v23 = vmul.f32 0.7978846, %v2388_v21  ;;  %v2387_v24 = vadd.f32 %v2385_v22, %v2371_v16 }
 0x97a   : > { %3320 = vtanh.f32 %v2390_v23  ;;  %v2389_v25 = vmul.f32 0.7978846, %v2387_v24 }
 0x97c   : > { %3322 = vtanh.f32 %v2389_v25 }
 0x987   : > { %v3321_v26 = vpop.eup %3320 }
 0x988   : > { %v2394_v27 = vadd.f32 1.0, %v3321_v26 }
 0x989   : > { %v3323_v51 = vpop.eup %3322 }
 0x98a   : > { %v2393_v29 = vadd.f32 1.0, %v3323_v51  ;;  %v2396_v32 = vmul.f32 %v2394_v27, %v2380_v30 }
 0x98c   : > { %v2395_v31 = vmul.f32 %v2393_v29, %v2379_v28 }
 0x98e   : > { %3148 = vmatprep.mubr.msk.f32.mxu0 %vm2410_vm14, %v2395_v31 }
 0x98f   : > { %3149 = vmatmul.mubr.msk.f32.vlgmr.msra.gmra.mxu0 %vm2410_vm14, %v2396_v32 }
 0xa4f   : > { %v3150_v33 = vpop.f32.mrf.mxu0 }
 0xa50   : > { %v2489_v42 = vadd.f32 %v3150_v33, %v2936_v45 }
 0xa51   : > { %v2483_v34 = vpop.f32.mrf.mxu0 }
 0xa52   : > { %v2484_v35 = vadd.f32 %v2936_v45, %v2483_v34  ;;  %v2493_v36 = vadd.f32 %v2489_v42, %v2286_v2 }
 0xa54   : > { %v2499_v37 = vsel %vm697_vm5, %v2493_v36, 0.0  ;;  %v2492_v38 = vadd.f32 %v2484_v35, %v4086_v63 }
 0xa55   : > { %2500 = vadd.xlane.f32.xlu0 %v2499_v37 }
 0xa56   : > { %v2496_v39 = vsel %vm697_vm5, %v2492_v38, 0.0 }
 0xa57   : > { %2497 = vadd.xlane.f32.xlu1 %v2496_v39 }
 0xade   : > { %v2501_v40 = vpop.xlane.xlu0 %2500 }
 0xadf   : > { %v2503_v41 = vmul.f32 0.03125, %v2501_v40 }
 0xae0   : > { %v2498_v43 = vpop.xlane.xlu1 %2497 }
 0xae1   : > { %v2505_v44 = vsub.f32 %v2493_v36, %v2503_v41  ;;  %v2502_v47 = vmul.f32 0.03125, %v2498_v43 }
 0xae3   : > { %v2504_v48 = vsub.f32 %v2492_v38, %v2502_v47  ;;  %v2507_v49 = vmul.f32 %v2505_v44, %v2505_v44 }
 0xae5   : > { %v2511_v52 = vsel %vm697_vm5, %v2507_v49, 0.0  ;;  %v2506_v53 = vmul.f32 %v2504_v48, %v2504_v48 }
 0xae6   : > { %2512 = vadd.xlane.f32.xlu0 %v2511_v52 }
 0xae7   : > { %v2508_v54 = vsel %vm697_vm5, %v2506_v53, 0.0 }
 0xae8   : > { %2509 = vadd.xlane.f32.xlu1 %v2508_v54 }
 0xb6f   : > { %v2513_v55 = vpop.xlane.xlu0 %2512 }
 0xb70   : > { %v2515_v50 = vmul.f32 0.03125, %v2513_v55 }
 0xb71   : > { %v2510_v56 = vpop.xlane.xlu1 %2509 }
 0xb72   : > { %v2517_v57 = vadd.f32 1e-12, %v2515_v50  ;;  %v2514_v46 = vmul.f32 0.03125, %v2510_v56 }
 0xb74   : > { %3324 = vrsqrt.f32 %v2517_v57  ;;  %v2516_v58 = vadd.f32 1e-12, %v2514_v46  ;;  %vm2527_vm15 = vcmp.eq.f32.partialorder %v2517_v57, inf  ;;  %v2530_v61 = vand.u32 2147483648, %v2517_v57 }
 0xb75   : > { %vm2529_vm0 = vcmp.eq.f32.partialorder %v2517_v57, 0.0 }
 0xb76   : > { %3326 = vrsqrt.f32 %v2516_v58  ;;  %vm2520_vm1 = vcmp.eq.f32.partialorder %v2516_v58, inf  ;;  %v2523_v2 = vand.u32 2147483648, %v2516_v58  ;;  %vm2522_vm2 = vcmp.eq.f32.partialorder %v2516_v58, 0.0 }
 0xb81   : > { %v3325_v59 = vpop.eup %3324 }
 0xb82   : > { %v2526_v60 = vmul.f32 %v3325_v59, %v2517_v57 }
 0xb83   : > { %v3327_v62 = vpop.eup %3326 }
 0xb84   : > { %v2528_v63 = vsel %vm2527_vm15, %v2517_v57, %v2526_v60  ;;  %v2519_v1 = vmul.f32 %v3327_v62, %v2516_v58 }
 0xb85   : > { %v2531_v0 = vsel %vm2529_vm0, %v2530_v61, %v2528_v63 }
 0xb86   : > { %3328 = vrcp.f32 %v2531_v0  ;;  %v2521_v3 = vsel %vm2520_vm1, %v2516_v58, %v2519_v1 }
 0xb87   : > { %v2524_v4 = vsel %vm2522_vm2, %v2523_v2, %v2521_v3 }
 0xb88   : > { %3330 = vrcp.f32 %v2524_v4 }
 0xb93   : > { %v3329_v5 = vpop.eup %3328 }
 0xb94   : > { %v2535_v7 = vmul.f32 %v3329_v5, %v2505_v44 }
 0xb95   : > { %v3331_v9 = vpop.eup %3330 }
 0xb96   : > { %v2541_v10 = vmul.f32 %v2939_v6, %v2535_v7  ;;  %v2533_v11 = vmul.f32 %v3331_v9, %v2504_v48 }
 0xb98   : > { %v2547_v12 = vadd.f32 %v2940_v8, %v2541_v10  ;;  %v2540_v13 = vmul.f32 %v2939_v6, %v2533_v11 }
 0xb9a   : > { %2556 = vrot.lane.b32.xlu0 %v2547_v12, %s3587_s19  ;;  %2549 = vst.msk [vmem:[#allocation2 + $0x8] sm:$0xff] %vm697_vm5, %v2547_v12  ;;  %v2546_v14 = vadd.f32 %v2940_v8, %v2540_v13  ;;  %v2559_v16 = vrot.slane %v2547_v12, 4 }
 0xb9c   : > { %2548 = vst.msk [vmem:[#allocation2] sm:$0xff] %vm697_vm5, %v2546_v14  ;;  %v2551_v15 = vrot.slane %v2546_v14, 4 }
 0xb9e   : > { %2552 = vrot.lane.b32.xlu1 %v2551_v15, %s3593_s2 }
 0xba2   : > { %2560 = vrot.lane.b32.xlu1 %v2559_v16, %s3580_s30 }
 0xc0c   : > { %v2557_v19 = vpop.permute.xlu0 %2556 }
 0xc10   : > { %v2553_v17 = vpop.permute.xlu1 %2552 }
 0xc11   : > { %v2563_v18 = vsel %vm697_vm5, %v2546_v14, %v2553_v17 }
 0xc12   : > { %v2564_v20 = vsel %vm2410_vm14, %v2563_v18, %v2557_v19  ;;  %2571 = sbr.rel (%p2941_p8) target bundleno = 3314 (0xcf2), region = 96 }
 0xc14   : > { %v2561_v21 = vpop.permute.xlu1 %2560 }
 0xc15   : > { %v2566_v22 = vsel %vm2565_vm3, %v2564_v20, %v2561_v21 }
 0xc16   : > { %2567 = vst [vmem:[%s3896_s22] sm:$0xf] %v2566_v22 }
 0xc17   : > { %v2579_v23 = vld [vmem:[%s4192_s10 + $0x18] sm:$0xff]  ;;  %v3594_v24 = vmov 0.0   ;;  %v2578_v25 = vld [vmem:[%s4192_s10 + $0x10] sm:$0xff]  ;;  %vm3595_vm4 = vmmov 0   ;;  %v2572_v26 = vrot.slane %v2547_v12, 7  ;;  %v2577_v51 = vld [vmem:[%s4192_s10 + $0x8] sm:$0xff] }
 0xc18   : > { %3151 = vmatprep.subr.mxu0 %v3594_v24  ;;  %3159 = vmatprep.mubr.msk.f32.mxu0 %vm3595_vm4, %v3594_v24  ;;  %vm2574_vm6 = vcmask 1040384   ;;  %v2576_v27 = vld [vmem:[%s4192_s10] sm:$0xff]  ;;  %vm2661_vm7 = vcmask 254976  }
 0xc19   : > { %3152 = vmatpush3.msra.mxu0 %v2579_v23  ;;  %v2575_v28 = vsel %vm2574_vm6, %v2546_v14, %v2572_v26  ;;  %v2942_v29 = vld [vmem:[%s4247_s14] ss:$0 sm:$0xff] }
 0xc1a   : > { %3153 = vmatprep.subr.mxu0 %v3594_v24 }
 0xc1b   : > { %3154 = vmatpush3.msra.mxu0 %v2578_v25 }
 0xc1c   : > { %3155 = vmatprep.subr.mxu0 %v3594_v24 }
 0xc1d   : > { %3156 = vmatpush3.msra.mxu0 %v2577_v51 }
 0xc1e   : > { %3157 = vmatprep.subr.mxu0 %v3594_v24 }
 0xc1f   : > { %3158 = vmatpush3.msra.mxu0 %v2576_v27 }
 0xc20   : > { %3160 = vmatmul.mubr.msk.f32.vlgmr.msra.gmra.mxu0 %vm697_vm5, %v2575_v28 }
 0xce0   : > { %v2656_v30 = vpop.f32.mrf.mxu0 }
 0xce1   : > { %v2657_v31 = vadd.f32 %v2942_v29, %v2656_v30 }
 0xce2   : > { %v3161_v32 = vpop.f32.mrf.mxu0 }
 0xce3   : > { %3332 = vtanh.f32 %v2657_v31 }
 0xcf0   : > { %v3333_v45 = vpop.eup %3332 }
 0xcf1   : > { %2662 = vst.msk [vmem:[#allocation13] sm:$0x3] %vm2661_vm7, %v3333_v45 }
 0xcf2 PF: > { %s4248_s19 = sld [smem:[#allocation25_spill]]  ;;  %s2945_s11 = sshll.u32 %s3689_s29, 6 }
 0xcf3   : > { %s4249_s0 = sld [smem:[#allocation30_spill]]  ;;  %s2677_s2 = sshll.u32 %s3896_s22, 4  ;;  %s2678_s2 = int_to_ptr.vmem [resolvable:$true] %s2677_s2 }
 0xcf4   : > { %s2664_s28 = scalar_lea.sflag [#allocation5], %s3860_s13  ;;  %s3468_s21 = scalar_lea.vmem %s2678_s2, 64 }
 0xcf5   : > { %p3469_p1 = scmp.ne.s32.totalorder %s2678_s2, %s3468_s21  ;;  %s3596_s16 = smov [#allocation12]  }
 0xcf6   : > { %s3472_s18 = sshll.u32 %s3596_s16, 4  ;;  %s3473_s18 = int_to_ptr.vmem [resolvable:$false] %s3472_s18 }
 0xcf7   : > { %s3474_s30 = scalar_lea.vmem %s3473_s18, 128  ;;  %p3475_p4 = scmp.lt.s32.totalorder %s2678_s2, %s3473_s18 }
 0xcf8   : > { %p4250_p2 = scmp.ne.s32.totalorder %s4248_s19, 0  ;;  %p3476_p9 = scmp.lt.s32.totalorder %s3474_s30, %s3468_s21 }
 0xcf9   : > { %s2675_s25 = scalar_lea.hbm %s4249_s0, %s2945_s11 }
 0xcfa   : > { %p3470_p10 = pnand %p3469_p1, %p4250_p2  ;;  %p3477_p7 = por %p3476_p9, %p3475_p4 }
 0xcfc   : > { %p3471_p5 = pneg %p3470_p10 }
 0xcfe   : > { %p3478_p12 = pnand %p3477_p7, %p3471_p5 }
 0xd00   : > { %3481 = shalt.err (!%p3478_p12)
}
 0xd01   : > { %s3482_s12 = scalar_lea.hbm %s2675_s25, 64  ;;  %s3486_s24 = scalar_lea.hbm %s4249_s0, 128 }
 0xd02   : > { %p3483_p0 = scmp.ne.s32.totalorder %s2675_s25, %s3482_s12  ;;  %p3487_p6 = scmp.lt.s32.totalorder %s2675_s25, %s4249_s0 }
 0xd03   : > { %p3488_p3 = scmp.lt.s32.totalorder %s3486_s24, %s3482_s12 }
 0xd04   : > { %p3484_p11 = pnand %p3483_p0, %p4250_p2 }
 0xd05   : > { %p3489_p8 = por %p3488_p3, %p3487_p6 }
 0xd06   : > { %p3485_p13 = pneg %p3484_p11 }
 0xd08   : > { %p3490_p1 = pnand %p3489_p8, %p3485_p13 }
 0xd0a   : > { %3493 = shalt.err (!%p3490_p1)
}
 0xd0b   : > { %3178 = dma.vmem_to_hbm [thread:$0]  (%p4250_p2), %s2678_s2, 64, %s2675_s25, %s2664_s28  }
 0xd0c   : > { %s3597_s20 = smov [#allocation13]   ;;  %p4251_p5 = scmp.eq.s32.totalorder %s3689_s29, 1 }
 0xd0d   : > { %s2688_s14 = sshll.u32 %s3597_s20, 4  ;;  %s2689_s14 = int_to_ptr.vmem [resolvable:$true] %s2688_s14 }
 0xd0e   : > { %s3494_s11 = scalar_lea.vmem %s2689_s14, 32  ;;  %p3501_p7 = scmp.lt.s32.totalorder %s2689_s14, %s2689_s14 }
 0xd0f   : > { %p3495_p10 = scmp.ne.s32.totalorder %s2689_s14, %s3494_s11  ;;  %p3502_p12 = scmp.lt.s32.totalorder %s3494_s11, %s3494_s11 }
 0xd11   : > { %p3496_p4 = pnand %p3495_p10, %p4251_p5  ;;  %p3503_p0 = por %p3502_p12, %p3501_p7 }
 0xd13   : > { %p3497_p9 = pneg %p3496_p4 }
 0xd15   : > { %p3504_p11 = pnand %p3503_p0, %p3497_p9 }
 0xd17   : > { %3507 = shalt.err (!%p3504_p11)
}
 0xd18   : > { %p4252_p13 = pmov %p4251_p5  ;;  %s4253_s19 = sld [smem:[#allocation31_spill]] }
 0xd19   : > { %p4254_p2 = pmov %p4251_p5 }
 0xd1e   : > { %3180 = dma.vmem_to_hbm [thread:$0]  (%p4252_p13), %s2689_s14, 32, %s4253_s19, [#allocation14]  }
 0xd1f   : > { %3547 = dma.done.wait (%p4254_p2), [#allocation14], 32   ;;  %p4255_p6 = pmov %p4254_p2 }
 0xd21   : > { %3549 = vsyncadd (%p4255_p6), [#allocation14], 4294967264 }
 0xd22 PF: > { %s4256_s25 = sld [smem:[#allocation20_spill]] }
 0xd23   : > { %s4257_s2 = sld [smem:[#allocation22_spill]] }
 0xd24   : > { %s4258_s28 = sld [smem:[#allocation21_spill]] }
 0xd28   : > { %s2704_s21 = sand.u32 1, %s4256_s25  }
 0xd29   : > { %p4259_p3 = scmp.ne.s32.totalorder %s4257_s2, 0  ;;  %s2705_s16 = scalar_lea.sflag [#allocation5], %s2704_s21 }
 0xd2a   : > { %p4260_p8 = scmp.ge.s32.totalorder %s4258_s28, 2 }
 0xd2c   : > { %p3202_p1 = pnand %p4260_p8, %p4259_p3 }
 0xd2e   : > { %p3203_p10 = pneg %p3202_p1 }
 0xd30   : > { %3551 = dma.done.wait (%p3203_p10), %s2705_s16, 64  }
 0xd31   : > { %3553 = vsyncadd (%p3203_p10), %s2705_s16, 4294967232  ;;  %s4261_s28 = sld [smem:[#allocation23_spill]]  ;;  %s4263_s25 = smov %s3560_s26 }
 0xd32   : > { %s4262_s18 = sld [smem:[#allocation24_spill]]  ;;  %s4264_s26 = smov %s3564_s27 }
 0xd37   : > { %p30_p5 = scmp.ge.s32.totalorder %s4261_s28, 4  }
 0xd38   : > { %s4265_s27 = smov %s4262_s18 }
 0xd39   :  { %32 = sbr.rel (!%p30_p5) target bundleno = 15 (0xf), region = 168 }
 0xd3e   :  { %2710 = vsyncpa [#allocation4], 1 }
 0xd3f   :  { %2712 = vsyncpa [#allocation4 + $0x1], 1 }
 0xd40   :  { %2713 = vsyncpa [#allocation7], 1 }
 0xd41   :  { %2714 = vsyncpa [#allocation10], 1 }
 0xd42   :  { %2716 = vsyncpa [#allocation10 + $0x1], 1 }
 0xd43   :  { %2717 = vsyncpa [#allocation5], 1 }
 0xd44   :  { %2719 = vsyncpa [#allocation5 + $0x1], 1 }
 0xd45   :  { %2720 = vsyncpa [#allocation14], 1 }

</bundles_post_ra>
